<compile_context>
chip_gen: v6e
topology: v6e:2x2x1
jax: 0.10.0
libtpu: 0.0.40
codegen_flags: <defaults>
</compile_context>

<pallas_src>
import functools
import math

import jax
import jax.numpy as jnp
from jax.experimental import pallas as pl
from jax.experimental.pallas import tpu as pltpu

C_MID = 16  # hidden channels of ConvReLU(G, 16)


def _round_up(x, m):
    return (x + m - 1) // m * m


# ----------------------------------------------------------------------------
# Kernel
# ----------------------------------------------------------------------------
def _pixel_view_weight_kernel(x_ref, w1t_ref, w2_ref, b2_ref, o_ref,
                              xcol_sc, m_sc, l_sc, *,
                              TD, G, P_out, tap_offsets):
    """Grid = (B, D // TD).  Each step processes TD depth slices of one batch
    element and folds them into the running softmax-max statistics."""
    dblk = pl.program_id(1)

    # ---- im2col into VMEM scratch: (9G, TD*P_out).  Taps go into contiguous
    #      8-row sublane blocks; depth slices into 128-aligned lane blocks.
    for td in range(TD):
        xd = x_ref[0, td].astype(jnp.float32)               # (G, P_in)
        c0 = td * P_out
        for t, off in enumerate(tap_offsets):
            xcol_sc[t * G:(t + 1) * G, c0:c0 + P_out] = xd[:, off:off + P_out]

    # ---- weights-stationary MXU matmul (lane-dense N = TD*P_out) + ReLU.
    hidden = jnp.dot(w1t_ref[...], xcol_sc[...],
                     preferred_element_type=jnp.float32)     # (16, TD*P_out)
    hidden = jnp.maximum(hidden, 0.0)

    # ---- 1x1 conv (16 -> 1, bias) as weighted sublane reduce (f32 epilogue).
    logits = jnp.sum(hidden * w2_ref[...], axis=0, keepdims=True) + b2_ref[0, 0]

    # ---- block-local softmax stats over the TD depths (lane-aligned slices,
    #      pure elementwise VPU/EUP work).
    blocks = [logits[:, td * P_out:(td + 1) * P_out] for td in range(TD)]
    bm = blocks[0]
    for blk in blocks[1:]:
        bm = jnp.maximum(bm, blk)
    bl = jnp.zeros_like(bm)
    for blk in blocks:
        bl = bl + jnp.exp(blk - bm)

    # ---- online merge with the running (max, sum-exp) statistics.
    @pl.when(dblk == 0)
    def _init():
        m_sc[...] = bm
        l_sc[...] = bl

    @pl.when(dblk > 0)
    def _update():
        m_new = jnp.maximum(m_sc[...], bm)
        l_sc[...] = (l_sc[...] * jnp.exp(m_sc[...] - m_new)
                     + bl * jnp.exp(bm - m_new))
        m_sc[...] = m_new

    @pl.when(dblk == pl.num_programs(1) - 1)
    def _finalize():
        # max_d softmax_d(logits) = 1 / sum_d exp(logits_d - max_d logits_d)
        o_ref[0] = pl.reciprocal(l_sc[...], approx=True).astype(o_ref.dtype)


# ----------------------------------------------------------------------------
# Wrapper (PyTorch layouts in / out)
# ----------------------------------------------------------------------------
def pixel_view_weight(x, w1_hwio, w2, b2):
    """x: (B, G, D, H, W) f32.  w1_hwio: (3, 3, G, 16).  w2: (16,).  b2: ().
    Returns (B, 1, H, W) f32 — matches PixelViewWeight.forward."""
    B, G, D, H, W = x.shape
    Hp, Wp = H + 2, W + 2

    # Output "slots" live on the flattened padded grid: slot j = h*Wp + w.
    n_valid = (H - 1) * Wp + W                  # highest valid slot + 1
    P_out = _round_up(n_valid, 128)             # lane-dense logits/output width
    max_off = 2 * Wp + 2                        # largest 3x3 tap lane offset
    P_in = _round_up(P_out + max_off, 128)      # lane-dense padded input width

    # Depth block size: TD depth slices per grid step (amortizes step overhead).
    TD = 1
    for cand in (4, 2):
        if D % cand == 0:
            TD = cand
            break

    # bf16 first (halves HBM traffic), contiguous permute, spatial pad, flatten.
    xl = jnp.transpose(x.astype(jnp.bfloat16), (0, 2, 1, 3, 4))    # (B,D,G,H,W)
    xp = jnp.pad(xl, ((0, 0), (0, 0), (0, 0), (1, 1), (1, 1)))     # (B,D,G,Hp,Wp)
    xf = xp.reshape(B, D, G, Hp * Wp)
    xf = jnp.pad(xf, ((0, 0), (0, 0), (0, 0), (0, P_in - Hp * Wp)))

    # Conv weights: (3,3,G,16) -> (16, 9G), rows in (dy, dx, g) tap order.
    w1t = jnp.transpose(w1_hwio.reshape(9 * G, C_MID)).astype(jnp.float32)
    w2r = jnp.asarray(w2, jnp.float32).reshape(C_MID, 1)
    b2r = jnp.asarray(b2, jnp.float32).reshape(1, 1)

    tap_offsets = tuple(dy * Wp + dx for dy in range(3) for dx in range(3))

    kernel = functools.partial(_pixel_view_weight_kernel, TD=TD, G=G,
                               P_out=P_out, tap_offsets=tap_offsets)
    out_flat = pl.pallas_call(
        kernel,
        out_shape=jax.ShapeDtypeStruct((B, 1, P_out), jnp.float32),
        grid=(B, D // TD),
        in_specs=[
            pl.BlockSpec((1, TD, G, P_in), lambda b, d: (b, d, 0, 0)),
            pl.BlockSpec((C_MID, 9 * G), lambda b, d: (0, 0)),
            pl.BlockSpec((C_MID, 1), lambda b, d: (0, 0)),
            pl.BlockSpec(memory_space=pltpu.MemorySpace.SMEM),   # scalar bias
        ],
        out_specs=pl.BlockSpec((1, 1, P_out), lambda b, d: (b, 0, 0)),
        scratch_shapes=[
            pltpu.VMEM((9 * G, TD * P_out), jnp.float32),   # im2col
            pltpu.VMEM((1, P_out), jnp.float32),            # running max
            pltpu.VMEM((1, P_out), jnp.float32),            # running sum-exp
        ],
        compiler_params=pltpu.CompilerParams(
            dimension_semantics=("parallel", "arbitrary"),
            vmem_limit_bytes=32 * 1024 * 1024),
    )(xf, w1t, w2r, b2r)

    # Extract valid slots j = h*Wp + w and reshape to (B, 1, H, W).
    out = out_flat[:, :, :H * Wp].reshape(B, 1, H, Wp)[:, :, :, :W]
    return out


# ----------------------------------------------------------------------------
# Pure-JAX reference (for the built-in correctness check)
# ----------------------------------------------------------------------------
def _reference(x, w1_hwio, w2, b2):
    B, G, D, H, W = x.shape
    xr = jnp.transpose(x, (0, 2, 1, 3, 4)).reshape(B * D, G, H, W)
    y = jax.lax.conv_general_dilated(
        xr, w1_hwio, window_strides=(1, 1), padding=((1, 1), (1, 1)),
        dimension_numbers=("NCHW", "HWIO", "NCHW"))
    y = jnp.maximum(y, 0.0)
    logits = jnp.einsum("nchw,c->nhw", y, w2) + b2
    logits = logits.reshape(B, D, H, W)
    p = jax.nn.softmax(logits, axis=1)
    return jnp.max(p, axis=1, keepdims=True)


# ----------------------------------------------------------------------------
if __name__ == "__main__":
    B, G, D, H, W = 2, 8, 8, 16, 16

    key = jax.random.PRNGKey(0)
    kx, kw1, kw2, kb2 = jax.random.split(key, 4)
    x = jax.random.normal(kx, (B, G, D, H, W), jnp.float32)
    w1 = jax.random.normal(kw1, (3, 3, G, C_MID), jnp.float32) / math.sqrt(9 * G)
    w2 = jax.random.normal(kw2, (C_MID,), jnp.float32) / math.sqrt(C_MID)
    b2 = 0.1 * jax.random.normal(kb2, (), jnp.float32)

    out = jax.jit(pixel_view_weight)(x, w1, w2, b2)
    out = jax.block_until_ready(out)
    assert out.shape == (B, 1, H, W), out.shape
    assert bool(jnp.all(jnp.isfinite(out)))

    # Reference on identically bf16-quantized activations (kernel math is f32).
    x_q = x.astype(jnp.bfloat16).astype(jnp.float32)
    ref = _reference(x_q, w1, w2, b2)
    err = float(jnp.max(jnp.abs(out - ref)))
    assert err < 5e-3, f"max abs err {err}"

    print("KERNEL_OK")
</pallas_src>

<mosaic_0001>
module attributes {stable_mosaic.version = 11 : i64} {
  func.func @_pixel_view_weight_kernel(%arg0: i32, %arg1: i32, %arg2: memref<1x4x8x512xbf16, #tpu.memory_space<vmem>>, %arg3: memref<16x72xf32, #tpu.memory_space<vmem>>, %arg4: memref<16x1xf32, #tpu.memory_space<vmem>>, %arg5: memref<1x1xf32, #tpu.memory_space<smem>>, %arg6: memref<1x1x384xf32, #tpu.memory_space<vmem>>, %arg7: memref<72x1536xf32, #tpu.memory_space<vmem>>, %arg8: memref<1x384xf32, #tpu.memory_space<vmem>>, %arg9: memref<1x384xf32, #tpu.memory_space<vmem>>) attributes {dimension_semantics = [#tpu.dimension_semantics<parallel>, #tpu.dimension_semantics<arbitrary>], iteration_bounds = array<i64: 2, 2>, scalar_prefetch = 0 : i64, scratch_operands = 3 : i64, tpu.core_type = #tpu.core_type<tc>, window_params = [{transform_indices = @transform_0, window_bounds = array<i64: 1, 4, 8, 512>}, {pipeline_mode = #tpu.pipeline_mode<synchronous>, transform_indices = @transform_1, window_bounds = array<i64: 16, 72>}, {pipeline_mode = #tpu.pipeline_mode<synchronous>, transform_indices = @transform_2, window_bounds = array<i64: 16, 1>}, {transform_indices = @transform_3, window_bounds = array<i64: 1, 1>}, {transform_indices = @transform_4, window_bounds = array<i64: 1, 1, 384>}]} {
    %c0 = arith.constant 0 : index
    %c0_0 = arith.constant 0 : index
    %c0_1 = arith.constant 0 : index
    %c0_2 = arith.constant 0 : index
    %0 = vector.load %arg2[%c0, %c0_0, %c0_1, %c0_2] : memref<1x4x8x512xbf16, #tpu.memory_space<vmem>>, vector<1x1x8x512xbf16>
    %1 = vector.shape_cast %0 : vector<1x1x8x512xbf16> to vector<8x512xbf16>
    %2 = arith.extf %1 : vector<8x512xbf16> to vector<8x512xf32>
    %3 = vector.extract_strided_slice %2 {offsets = [0, 0], sizes = [8, 384], strides = [1, 1]} : vector<8x512xf32> to vector<8x384xf32>
    %c0_3 = arith.constant 0 : index
    %c0_4 = arith.constant 0 : index
    %4 = vector.load %arg7[%c0_3, %c0_4] : memref<72x1536xf32, #tpu.memory_space<vmem>>, vector<8x384xf32>
    tpu.vector_store %arg7[%c0_3, %c0_4], %3 {strides = array<i32>} : memref<72x1536xf32, #tpu.memory_space<vmem>>, vector<8x384xf32>,
    %5 = vector.extract_strided_slice %2 {offsets = [0, 1], sizes = [8, 384], strides = [1, 1]} : vector<8x512xf32> to vector<8x384xf32>
    %c8 = arith.constant 8 : index
    %c0_5 = arith.constant 0 : index
    %6 = vector.load %arg7[%c8, %c0_5] : memref<72x1536xf32, #tpu.memory_space<vmem>>, vector<8x384xf32>
    tpu.vector_store %arg7[%c8, %c0_5], %5 {strides = array<i32>} : memref<72x1536xf32, #tpu.memory_space<vmem>>, vector<8x384xf32>,
    %7 = vector.extract_strided_slice %2 {offsets = [0, 2], sizes = [8, 384], strides = [1, 1]} : vector<8x512xf32> to vector<8x384xf32>
    %c16 = arith.constant 16 : index
    %c0_6 = arith.constant 0 : index
    %8 = vector.load %arg7[%c16, %c0_6] : memref<72x1536xf32, #tpu.memory_space<vmem>>, vector<8x384xf32>
    tpu.vector_store %arg7[%c16, %c0_6], %7 {strides = array<i32>} : memref<72x1536xf32, #tpu.memory_space<vmem>>, vector<8x384xf32>,
    %9 = vector.extract_strided_slice %2 {offsets = [0, 18], sizes = [8, 384], strides = [1, 1]} : vector<8x512xf32> to vector<8x384xf32>
    %c24 = arith.constant 24 : index
    %c0_7 = arith.constant 0 : index
    %10 = vector.load %arg7[%c24, %c0_7] : memref<72x1536xf32, #tpu.memory_space<vmem>>, vector<8x384xf32>
    tpu.vector_store %arg7[%c24, %c0_7], %9 {strides = array<i32>} : memref<72x1536xf32, #tpu.memory_space<vmem>>, vector<8x384xf32>,
    %11 = vector.extract_strided_slice %2 {offsets = [0, 19], sizes = [8, 384], strides = [1, 1]} : vector<8x512xf32> to vector<8x384xf32>
    %c32 = arith.constant 32 : index
    %c0_8 = arith.constant 0 : index
    %12 = vector.load %arg7[%c32, %c0_8] : memref<72x1536xf32, #tpu.memory_space<vmem>>, vector<8x384xf32>
    tpu.vector_store %arg7[%c32, %c0_8], %11 {strides = array<i32>} : memref<72x1536xf32, #tpu.memory_space<vmem>>, vector<8x384xf32>,
    %13 = vector.extract_strided_slice %2 {offsets = [0, 20], sizes = [8, 384], strides = [1, 1]} : vector<8x512xf32> to vector<8x384xf32>
    %c40 = arith.constant 40 : index
    %c0_9 = arith.constant 0 : index
    %14 = vector.load %arg7[%c40, %c0_9] : memref<72x1536xf32, #tpu.memory_space<vmem>>, vector<8x384xf32>
    tpu.vector_store %arg7[%c40, %c0_9], %13 {strides = array<i32>} : memref<72x1536xf32, #tpu.memory_space<vmem>>, vector<8x384xf32>,
    %15 = vector.extract_strided_slice %2 {offsets = [0, 36], sizes = [8, 384], strides = [1, 1]} : vector<8x512xf32> to vector<8x384xf32>
    %c48 = arith.constant 48 : index
    %c0_10 = arith.constant 0 : index
    %16 = vector.load %arg7[%c48, %c0_10] : memref<72x1536xf32, #tpu.memory_space<vmem>>, vector<8x384xf32>
    tpu.vector_store %arg7[%c48, %c0_10], %15 {strides = array<i32>} : memref<72x1536xf32, #tpu.memory_space<vmem>>, vector<8x384xf32>,
    %17 = vector.extract_strided_slice %2 {offsets = [0, 37], sizes = [8, 384], strides = [1, 1]} : vector<8x512xf32> to vector<8x384xf32>
    %c56 = arith.constant 56 : index
    %c0_11 = arith.constant 0 : index
    %18 = vector.load %arg7[%c56, %c0_11] : memref<72x1536xf32, #tpu.memory_space<vmem>>, vector<8x384xf32>
    tpu.vector_store %arg7[%c56, %c0_11], %17 {strides = array<i32>} : memref<72x1536xf32, #tpu.memory_space<vmem>>, vector<8x384xf32>,
    %19 = vector.extract_strided_slice %2 {offsets = [0, 38], sizes = [8, 384], strides = [1, 1]} : vector<8x512xf32> to vector<8x384xf32>
    %c64 = arith.constant 64 : index
    %c0_12 = arith.constant 0 : index
    %20 = vector.load %arg7[%c64, %c0_12] : memref<72x1536xf32, #tpu.memory_space<vmem>>, vector<8x384xf32>
    tpu.vector_store %arg7[%c64, %c0_12], %19 {strides = array<i32>} : memref<72x1536xf32, #tpu.memory_space<vmem>>, vector<8x384xf32>,
    %c0_13 = arith.constant 0 : index
    %c1 = arith.constant 1 : index
    %c0_14 = arith.constant 0 : index
    %c0_15 = arith.constant 0 : index
    %21 = vector.load %arg2[%c0_13, %c1, %c0_14, %c0_15] : memref<1x4x8x512xbf16, #tpu.memory_space<vmem>>, vector<1x1x8x512xbf16>
    %22 = vector.shape_cast %21 : vector<1x1x8x512xbf16> to vector<8x512xbf16>
    %23 = arith.extf %22 : vector<8x512xbf16> to vector<8x512xf32>
    %24 = vector.extract_strided_slice %23 {offsets = [0, 0], sizes = [8, 384], strides = [1, 1]} : vector<8x512xf32> to vector<8x384xf32>
    %c0_16 = arith.constant 0 : index
    %c384 = arith.constant 384 : index
    %25 = vector.load %arg7[%c0_16, %c384] : memref<72x1536xf32, #tpu.memory_space<vmem>>, vector<8x384xf32>
    tpu.vector_store %arg7[%c0_16, %c384], %24 {strides = array<i32>} : memref<72x1536xf32, #tpu.memory_space<vmem>>, vector<8x384xf32>,
    %26 = vector.extract_strided_slice %23 {offsets = [0, 1], sizes = [8, 384], strides = [1, 1]} : vector<8x512xf32> to vector<8x384xf32>
    %c8_17 = arith.constant 8 : index
    %c384_18 = arith.constant 384 : index
    %27 = vector.load %arg7[%c8_17, %c384_18] : memref<72x1536xf32, #tpu.memory_space<vmem>>, vector<8x384xf32>
    tpu.vector_store %arg7[%c8_17, %c384_18], %26 {strides = array<i32>} : memref<72x1536xf32, #tpu.memory_space<vmem>>, vector<8x384xf32>,
    %28 = vector.extract_strided_slice %23 {offsets = [0, 2], sizes = [8, 384], strides = [1, 1]} : vector<8x512xf32> to vector<8x384xf32>
    %c16_19 = arith.constant 16 : index
    %c384_20 = arith.constant 384 : index
    %29 = vector.load %arg7[%c16_19, %c384_20] : memref<72x1536xf32, #tpu.memory_space<vmem>>, vector<8x384xf32>
    tpu.vector_store %arg7[%c16_19, %c384_20], %28 {strides = array<i32>} : memref<72x1536xf32, #tpu.memory_space<vmem>>, vector<8x384xf32>,
    %30 = vector.extract_strided_slice %23 {offsets = [0, 18], sizes = [8, 384], strides = [1, 1]} : vector<8x512xf32> to vector<8x384xf32>
    %c24_21 = arith.constant 24 : index
    %c384_22 = arith.constant 384 : index
    %31 = vector.load %arg7[%c24_21, %c384_22] : memref<72x1536xf32, #tpu.memory_space<vmem>>, vector<8x384xf32>
    tpu.vector_store %arg7[%c24_21, %c384_22], %30 {strides = array<i32>} : memref<72x1536xf32, #tpu.memory_space<vmem>>, vector<8x384xf32>,
    %32 = vector.extract_strided_slice %23 {offsets = [0, 19], sizes = [8, 384], strides = [1, 1]} : vector<8x512xf32> to vector<8x384xf32>
    %c32_23 = arith.constant 32 : index
    %c384_24 = arith.constant 384 : index
    %33 = vector.load %arg7[%c32_23, %c384_24] : memref<72x1536xf32, #tpu.memory_space<vmem>>, vector<8x384xf32>
    tpu.vector_store %arg7[%c32_23, %c384_24], %32 {strides = array<i32>} : memref<72x1536xf32, #tpu.memory_space<vmem>>, vector<8x384xf32>,
    %34 = vector.extract_strided_slice %23 {offsets = [0, 20], sizes = [8, 384], strides = [1, 1]} : vector<8x512xf32> to vector<8x384xf32>
    %c40_25 = arith.constant 40 : index
    %c384_26 = arith.constant 384 : index
    %35 = vector.load %arg7[%c40_25, %c384_26] : memref<72x1536xf32, #tpu.memory_space<vmem>>, vector<8x384xf32>
    tpu.vector_store %arg7[%c40_25, %c384_26], %34 {strides = array<i32>} : memref<72x1536xf32, #tpu.memory_space<vmem>>, vector<8x384xf32>,
    %36 = vector.extract_strided_slice %23 {offsets = [0, 36], sizes = [8, 384], strides = [1, 1]} : vector<8x512xf32> to vector<8x384xf32>
    %c48_27 = arith.constant 48 : index
    %c384_28 = arith.constant 384 : index
    %37 = vector.load %arg7[%c48_27, %c384_28] : memref<72x1536xf32, #tpu.memory_space<vmem>>, vector<8x384xf32>
    tpu.vector_store %arg7[%c48_27, %c384_28], %36 {strides = array<i32>} : memref<72x1536xf32, #tpu.memory_space<vmem>>, vector<8x384xf32>,
    %38 = vector.extract_strided_slice %23 {offsets = [0, 37], sizes = [8, 384], strides = [1, 1]} : vector<8x512xf32> to vector<8x384xf32>
    %c56_29 = arith.constant 56 : index
    %c384_30 = arith.constant 384 : index
    %39 = vector.load %arg7[%c56_29, %c384_30] : memref<72x1536xf32, #tpu.memory_space<vmem>>, vector<8x384xf32>
    tpu.vector_store %arg7[%c56_29, %c384_30], %38 {strides = array<i32>} : memref<72x1536xf32, #tpu.memory_space<vmem>>, vector<8x384xf32>,
    %40 = vector.extract_strided_slice %23 {offsets = [0, 38], sizes = [8, 384], strides = [1, 1]} : vector<8x512xf32> to vector<8x384xf32>
    %c64_31 = arith.constant 64 : index
    %c384_32 = arith.constant 384 : index
    %41 = vector.load %arg7[%c64_31, %c384_32] : memref<72x1536xf32, #tpu.memory_space<vmem>>, vector<8x384xf32>
    tpu.vector_store %arg7[%c64_31, %c384_32], %40 {strides = array<i32>} : memref<72x1536xf32, #tpu.memory_space<vmem>>, vector<8x384xf32>,
    %c0_33 = arith.constant 0 : index
    %c2 = arith.constant 2 : index
    %c0_34 = arith.constant 0 : index
    %c0_35 = arith.constant 0 : index
    %42 = vector.load %arg2[%c0_33, %c2, %c0_34, %c0_35] : memref<1x4x8x512xbf16, #tpu.memory_space<vmem>>, vector<1x1x8x512xbf16>
    %43 = vector.shape_cast %42 : vector<1x1x8x512xbf16> to vector<8x512xbf16>
    %44 = arith.extf %43 : vector<8x512xbf16> to vector<8x512xf32>
    %45 = vector.extract_strided_slice %44 {offsets = [0, 0], sizes = [8, 384], strides = [1, 1]} : vector<8x512xf32> to vector<8x384xf32>
    %c0_36 = arith.constant 0 : index
    %c768 = arith.constant 768 : index
    %46 = vector.load %arg7[%c0_36, %c768] : memref<72x1536xf32, #tpu.memory_space<vmem>>, vector<8x384xf32>
    tpu.vector_store %arg7[%c0_36, %c768], %45 {strides = array<i32>} : memref<72x1536xf32, #tpu.memory_space<vmem>>, vector<8x384xf32>,
    %47 = vector.extract_strided_slice %44 {offsets = [0, 1], sizes = [8, 384], strides = [1, 1]} : vector<8x512xf32> to vector<8x384xf32>
    %c8_37 = arith.constant 8 : index
    %c768_38 = arith.constant 768 : index
    %48 = vector.load %arg7[%c8_37, %c768_38] : memref<72x1536xf32, #tpu.memory_space<vmem>>, vector<8x384xf32>
    tpu.vector_store %arg7[%c8_37, %c768_38], %47 {strides = array<i32>} : memref<72x1536xf32, #tpu.memory_space<vmem>>, vector<8x384xf32>,
    %49 = vector.extract_strided_slice %44 {offsets = [0, 2], sizes = [8, 384], strides = [1, 1]} : vector<8x512xf32> to vector<8x384xf32>
    %c16_39 = arith.constant 16 : index
    %c768_40 = arith.constant 768 : index
    %50 = vector.load %arg7[%c16_39, %c768_40] : memref<72x1536xf32, #tpu.memory_space<vmem>>, vector<8x384xf32>
    tpu.vector_store %arg7[%c16_39, %c768_40], %49 {strides = array<i32>} : memref<72x1536xf32, #tpu.memory_space<vmem>>, vector<8x384xf32>,
    %51 = vector.extract_strided_slice %44 {offsets = [0, 18], sizes = [8, 384], strides = [1, 1]} : vector<8x512xf32> to vector<8x384xf32>
    %c24_41 = arith.constant 24 : index
    %c768_42 = arith.constant 768 : index
    %52 = vector.load %arg7[%c24_41, %c768_42] : memref<72x1536xf32, #tpu.memory_space<vmem>>, vector<8x384xf32>
    tpu.vector_store %arg7[%c24_41, %c768_42], %51 {strides = array<i32>} : memref<72x1536xf32, #tpu.memory_space<vmem>>, vector<8x384xf32>,
    %53 = vector.extract_strided_slice %44 {offsets = [0, 19], sizes = [8, 384], strides = [1, 1]} : vector<8x512xf32> to vector<8x384xf32>
    %c32_43 = arith.constant 32 : index
    %c768_44 = arith.constant 768 : index
    %54 = vector.load %arg7[%c32_43, %c768_44] : memref<72x1536xf32, #tpu.memory_space<vmem>>, vector<8x384xf32>
    tpu.vector_store %arg7[%c32_43, %c768_44], %53 {strides = array<i32>} : memref<72x1536xf32, #tpu.memory_space<vmem>>, vector<8x384xf32>,
    %55 = vector.extract_strided_slice %44 {offsets = [0, 20], sizes = [8, 384], strides = [1, 1]} : vector<8x512xf32> to vector<8x384xf32>
    %c40_45 = arith.constant 40 : index
    %c768_46 = arith.constant 768 : index
    %56 = vector.load %arg7[%c40_45, %c768_46] : memref<72x1536xf32, #tpu.memory_space<vmem>>, vector<8x384xf32>
    tpu.vector_store %arg7[%c40_45, %c768_46], %55 {strides = array<i32>} : memref<72x1536xf32, #tpu.memory_space<vmem>>, vector<8x384xf32>,
    %57 = vector.extract_strided_slice %44 {offsets = [0, 36], sizes = [8, 384], strides = [1, 1]} : vector<8x512xf32> to vector<8x384xf32>
    %c48_47 = arith.constant 48 : index
    %c768_48 = arith.constant 768 : index
    %58 = vector.load %arg7[%c48_47, %c768_48] : memref<72x1536xf32, #tpu.memory_space<vmem>>, vector<8x384xf32>
    tpu.vector_store %arg7[%c48_47, %c768_48], %57 {strides = array<i32>} : memref<72x1536xf32, #tpu.memory_space<vmem>>, vector<8x384xf32>,
    %59 = vector.extract_strided_slice %44 {offsets = [0, 37], sizes = [8, 384], strides = [1, 1]} : vector<8x512xf32> to vector<8x384xf32>
    %c56_49 = arith.constant 56 : index
    %c768_50 = arith.constant 768 : index
    %60 = vector.load %arg7[%c56_49, %c768_50] : memref<72x1536xf32, #tpu.memory_space<vmem>>, vector<8x384xf32>
    tpu.vector_store %arg7[%c56_49, %c768_50], %59 {strides = array<i32>} : memref<72x1536xf32, #tpu.memory_space<vmem>>, vector<8x384xf32>,
    %61 = vector.extract_strided_slice %44 {offsets = [0, 38], sizes = [8, 384], strides = [1, 1]} : vector<8x512xf32> to vector<8x384xf32>
    %c64_51 = arith.constant 64 : index
    %c768_52 = arith.constant 768 : index
    %62 = vector.load %arg7[%c64_51, %c768_52] : memref<72x1536xf32, #tpu.memory_space<vmem>>, vector<8x384xf32>
    tpu.vector_store %arg7[%c64_51, %c768_52], %61 {strides = array<i32>} : memref<72x1536xf32, #tpu.memory_space<vmem>>, vector<8x384xf32>,
    %c0_53 = arith.constant 0 : index
    %c3 = arith.constant 3 : index
    %c0_54 = arith.constant 0 : index
    %c0_55 = arith.constant 0 : index
    %63 = vector.load %arg2[%c0_53, %c3, %c0_54, %c0_55] : memref<1x4x8x512xbf16, #tpu.memory_space<vmem>>, vector<1x1x8x512xbf16>
    %64 = vector.shape_cast %63 : vector<1x1x8x512xbf16> to vector<8x512xbf16>
    %65 = arith.extf %64 : vector<8x512xbf16> to vector<8x512xf32>
    %66 = vector.extract_strided_slice %65 {offsets = [0, 0], sizes = [8, 384], strides = [1, 1]} : vector<8x512xf32> to vector<8x384xf32>
    %c0_56 = arith.constant 0 : index
    %c1152 = arith.constant 1152 : index
    %67 = vector.load %arg7[%c0_56, %c1152] : memref<72x1536xf32, #tpu.memory_space<vmem>>, vector<8x384xf32>
    tpu.vector_store %arg7[%c0_56, %c1152], %66 {strides = array<i32>} : memref<72x1536xf32, #tpu.memory_space<vmem>>, vector<8x384xf32>,
    %68 = vector.extract_strided_slice %65 {offsets = [0, 1], sizes = [8, 384], strides = [1, 1]} : vector<8x512xf32> to vector<8x384xf32>
    %c8_57 = arith.constant 8 : index
    %c1152_58 = arith.constant 1152 : index
    %69 = vector.load %arg7[%c8_57, %c1152_58] : memref<72x1536xf32, #tpu.memory_space<vmem>>, vector<8x384xf32>
    tpu.vector_store %arg7[%c8_57, %c1152_58], %68 {strides = array<i32>} : memref<72x1536xf32, #tpu.memory_space<vmem>>, vector<8x384xf32>,
    %70 = vector.extract_strided_slice %65 {offsets = [0, 2], sizes = [8, 384], strides = [1, 1]} : vector<8x512xf32> to vector<8x384xf32>
    %c16_59 = arith.constant 16 : index
    %c1152_60 = arith.constant 1152 : index
    %71 = vector.load %arg7[%c16_59, %c1152_60] : memref<72x1536xf32, #tpu.memory_space<vmem>>, vector<8x384xf32>
    tpu.vector_store %arg7[%c16_59, %c1152_60], %70 {strides = array<i32>} : memref<72x1536xf32, #tpu.memory_space<vmem>>, vector<8x384xf32>,
    %72 = vector.extract_strided_slice %65 {offsets = [0, 18], sizes = [8, 384], strides = [1, 1]} : vector<8x512xf32> to vector<8x384xf32>
    %c24_61 = arith.constant 24 : index
    %c1152_62 = arith.constant 1152 : index
    %73 = vector.load %arg7[%c24_61, %c1152_62] : memref<72x1536xf32, #tpu.memory_space<vmem>>, vector<8x384xf32>
    tpu.vector_store %arg7[%c24_61, %c1152_62], %72 {strides = array<i32>} : memref<72x1536xf32, #tpu.memory_space<vmem>>, vector<8x384xf32>,
    %74 = vector.extract_strided_slice %65 {offsets = [0, 19], sizes = [8, 384], strides = [1, 1]} : vector<8x512xf32> to vector<8x384xf32>
    %c32_63 = arith.constant 32 : index
    %c1152_64 = arith.constant 1152 : index
    %75 = vector.load %arg7[%c32_63, %c1152_64] : memref<72x1536xf32, #tpu.memory_space<vmem>>, vector<8x384xf32>
    tpu.vector_store %arg7[%c32_63, %c1152_64], %74 {strides = array<i32>} : memref<72x1536xf32, #tpu.memory_space<vmem>>, vector<8x384xf32>,
    %76 = vector.extract_strided_slice %65 {offsets = [0, 20], sizes = [8, 384], strides = [1, 1]} : vector<8x512xf32> to vector<8x384xf32>
    %c40_65 = arith.constant 40 : index
    %c1152_66 = arith.constant 1152 : index
    %77 = vector.load %arg7[%c40_65, %c1152_66] : memref<72x1536xf32, #tpu.memory_space<vmem>>, vector<8x384xf32>
    tpu.vector_store %arg7[%c40_65, %c1152_66], %76 {strides = array<i32>} : memref<72x1536xf32, #tpu.memory_space<vmem>>, vector<8x384xf32>,
    %78 = vector.extract_strided_slice %65 {offsets = [0, 36], sizes = [8, 384], strides = [1, 1]} : vector<8x512xf32> to vector<8x384xf32>
    %c48_67 = arith.constant 48 : index
    %c1152_68 = arith.constant 1152 : index
    %79 = vector.load %arg7[%c48_67, %c1152_68] : memref<72x1536xf32, #tpu.memory_space<vmem>>, vector<8x384xf32>
    tpu.vector_store %arg7[%c48_67, %c1152_68], %78 {strides = array<i32>} : memref<72x1536xf32, #tpu.memory_space<vmem>>, vector<8x384xf32>,
    %80 = vector.extract_strided_slice %65 {offsets = [0, 37], sizes = [8, 384], strides = [1, 1]} : vector<8x512xf32> to vector<8x384xf32>
    %c56_69 = arith.constant 56 : index
    %c1152_70 = arith.constant 1152 : index
    %81 = vector.load %arg7[%c56_69, %c1152_70] : memref<72x1536xf32, #tpu.memory_space<vmem>>, vector<8x384xf32>
    tpu.vector_store %arg7[%c56_69, %c1152_70], %80 {strides = array<i32>} : memref<72x1536xf32, #tpu.memory_space<vmem>>, vector<8x384xf32>,
    %82 = vector.extract_strided_slice %65 {offsets = [0, 38], sizes = [8, 384], strides = [1, 1]} : vector<8x512xf32> to vector<8x384xf32>
    %c64_71 = arith.constant 64 : index
    %c1152_72 = arith.constant 1152 : index
    %83 = vector.load %arg7[%c64_71, %c1152_72] : memref<72x1536xf32, #tpu.memory_space<vmem>>, vector<8x384xf32>
    tpu.vector_store %arg7[%c64_71, %c1152_72], %82 {strides = array<i32>} : memref<72x1536xf32, #tpu.memory_space<vmem>>, vector<8x384xf32>,
    %c0_73 = arith.constant 0 : index
    %c0_74 = arith.constant 0 : index
    %84 = vector.load %arg3[%c0_73, %c0_74] : memref<16x72xf32, #tpu.memory_space<vmem>>, vector<16x72xf32>
    %c0_75 = arith.constant 0 : index
    %c0_76 = arith.constant 0 : index
    %85 = vector.load %arg7[%c0_75, %c0_76] : memref<72x1536xf32, #tpu.memory_space<vmem>>, vector<72x1536xf32>
    %cst = arith.constant dense<0.000000e+00> : vector<16x1536xf32>
    %86 = tpu.matmul %84, %85, %cst {dimension_numbers = #tpu.dot_dimension_numbers<[1], [0], [0], [1], [0, 0, 1, 1], [], []>} : vector<16x72xf32>, vector<72x1536xf32>, vector<16x1536xf32> -> vector<16x1536xf32>
    %cst_77 = arith.constant 0.000000e+00 : f32
    %87 = vector.broadcast %cst_77 : f32 to vector<16x1536xf32>
    %88 = arith.maximumf %86, %87 : vector<16x1536xf32>
    %c0_78 = arith.constant 0 : index
    %c0_79 = arith.constant 0 : index
    %89 = vector.load %arg4[%c0_78, %c0_79] : memref<16x1xf32, #tpu.memory_space<vmem>>, vector<16x1xf32>
    %90 = vector.broadcast %89 : vector<16x1xf32> to vector<16x1536xf32>
    %91 = arith.mulf %88, %90 : vector<16x1536xf32>
    %cst_80 = arith.constant dense<0.000000e+00> : vector<1536xf32>
    %92 = vector.multi_reduction <add>, %91, %cst_80 [0] : vector<16x1536xf32> to vector<1536xf32>
    %93 = vector.shape_cast %92 : vector<1536xf32> to vector<1x1536xf32>
    %c0_81 = arith.constant 0 : index
    %c0_82 = arith.constant 0 : index
    %94 = memref.load %arg5[%c0_81, %c0_82] : memref<1x1xf32, #tpu.memory_space<smem>>
    %95 = vector.broadcast %94 : f32 to vector<1x1536xf32>
    %96 = arith.addf %93, %95 : vector<1x1536xf32>
    %97 = vector.extract_strided_slice %96 {offsets = [0, 0], sizes = [1, 384], strides = [1, 1]} : vector<1x1536xf32> to vector<1x384xf32>
    %98 = vector.extract_strided_slice %96 {offsets = [0, 384], sizes = [1, 384], strides = [1, 1]} : vector<1x1536xf32> to vector<1x384xf32>
    %99 = vector.extract_strided_slice %96 {offsets = [0, 768], sizes = [1, 384], strides = [1, 1]} : vector<1x1536xf32> to vector<1x384xf32>
    %100 = vector.extract_strided_slice %96 {offsets = [0, 1152], sizes = [1, 384], strides = [1, 1]} : vector<1x1536xf32> to vector<1x384xf32>
    %101 = arith.maximumf %97, %98 : vector<1x384xf32>
    %102 = arith.maximumf %101, %99 : vector<1x384xf32>
    %103 = arith.maximumf %102, %100 : vector<1x384xf32>
    %cst_83 = arith.constant 0.000000e+00 : f32
    %104 = vector.broadcast %cst_83 : f32 to vector<1x384xf32>
    %105 = arith.subf %97, %103 : vector<1x384xf32>
    %106 = math.exp %105 : vector<1x384xf32>
    %107 = arith.addf %104, %106 : vector<1x384xf32>
    %108 = arith.subf %98, %103 : vector<1x384xf32>
    %109 = math.exp %108 : vector<1x384xf32>
    %110 = arith.addf %107, %109 : vector<1x384xf32>
    %111 = arith.subf %99, %103 : vector<1x384xf32>
    %112 = math.exp %111 : vector<1x384xf32>
    %113 = arith.addf %110, %112 : vector<1x384xf32>
    %114 = arith.subf %100, %103 : vector<1x384xf32>
    %115 = math.exp %114 : vector<1x384xf32>
    %116 = arith.addf %113, %115 : vector<1x384xf32>
    %c0_i32 = arith.constant 0 : i32
    %117 = arith.cmpi eq, %arg1, %c0_i32 : i32
    %118 = arith.extui %117 : i1 to i32
    %c0_i32_84 = arith.constant 0 : i32
    %119 = arith.cmpi ne, %118, %c0_i32_84 : i32
    scf.if %119 {
      %c0_88 = arith.constant 0 : index
      %c0_89 = arith.constant 0 : index
      %126 = vector.load %arg8[%c0_88, %c0_89] : memref<1x384xf32, #tpu.memory_space<vmem>>, vector<1x384xf32>
      tpu.vector_store %arg8[%c0_88, %c0_89], %103 {strides = array<i32>} : memref<1x384xf32, #tpu.memory_space<vmem>>, vector<1x384xf32>,
      %c0_90 = arith.constant 0 : index
      %c0_91 = arith.constant 0 : index
      %127 = vector.load %arg9[%c0_90, %c0_91] : memref<1x384xf32, #tpu.memory_space<vmem>>, vector<1x384xf32>
      tpu.vector_store %arg9[%c0_90, %c0_91], %116 {strides = array<i32>} : memref<1x384xf32, #tpu.memory_space<vmem>>, vector<1x384xf32>,
    } else {
    }
    %c0_i32_85 = arith.constant 0 : i32
    %120 = arith.cmpi sgt, %arg1, %c0_i32_85 : i32
    %121 = arith.extui %120 : i1 to i32
    %c0_i32_86 = arith.constant 0 : i32
    %122 = arith.cmpi ne, %121, %c0_i32_86 : i32
    scf.if %122 {
      %c0_88 = arith.constant 0 : index
      %c0_89 = arith.constant 0 : index
      %126 = vector.load %arg8[%c0_88, %c0_89] : memref<1x384xf32, #tpu.memory_space<vmem>>, vector<1x384xf32>
      %127 = arith.maximumf %126, %103 : vector<1x384xf32>
      %c0_90 = arith.constant 0 : index
      %c0_91 = arith.constant 0 : index
      %128 = vector.load %arg9[%c0_90, %c0_91] : memref<1x384xf32, #tpu.memory_space<vmem>>, vector<1x384xf32>
      %c0_92 = arith.constant 0 : index
      %c0_93 = arith.constant 0 : index
      %129 = vector.load %arg8[%c0_92, %c0_93] : memref<1x384xf32, #tpu.memory_space<vmem>>, vector<1x384xf32>
      %130 = arith.subf %129, %127 : vector<1x384xf32>
      %131 = math.exp %130 : vector<1x384xf32>
      %132 = arith.mulf %128, %131 : vector<1x384xf32>
      %133 = arith.subf %103, %127 : vector<1x384xf32>
      %134 = math.exp %133 : vector<1x384xf32>
      %135 = arith.mulf %116, %134 : vector<1x384xf32>
      %136 = arith.addf %132, %135 : vector<1x384xf32>
      %c0_94 = arith.constant 0 : index
      %c0_95 = arith.constant 0 : index
      %137 = vector.load %arg9[%c0_94, %c0_95] : memref<1x384xf32, #tpu.memory_space<vmem>>, vector<1x384xf32>
      tpu.vector_store %arg9[%c0_94, %c0_95], %136 {strides = array<i32>} : memref<1x384xf32, #tpu.memory_space<vmem>>, vector<1x384xf32>,
      %c0_96 = arith.constant 0 : index
      %c0_97 = arith.constant 0 : index
      %138 = vector.load %arg8[%c0_96, %c0_97] : memref<1x384xf32, #tpu.memory_space<vmem>>, vector<1x384xf32>
      tpu.vector_store %arg8[%c0_96, %c0_97], %127 {strides = array<i32>} : memref<1x384xf32, #tpu.memory_space<vmem>>, vector<1x384xf32>,
    } else {
    }
    %c1_i32 = arith.constant 1 : i32
    %123 = arith.cmpi eq, %arg1, %c1_i32 : i32
    %124 = arith.extui %123 : i1 to i32
    %c0_i32_87 = arith.constant 0 : i32
    %125 = arith.cmpi ne, %124, %c0_i32_87 : i32
    scf.if %125 {
      %c0_88 = arith.constant 0 : index
      %c0_89 = arith.constant 0 : index
      %126 = vector.load %arg9[%c0_88, %c0_89] : memref<1x384xf32, #tpu.memory_space<vmem>>, vector<1x384xf32>
      %127 = tpu.reciprocal %126 {approx = true} : vector<1x384xf32> -> vector<1x384xf32>
      %c0_90 = arith.constant 0 : index
      %c0_91 = arith.constant 0 : index
      %c0_92 = arith.constant 0 : index
      %128 = vector.load %arg6[%c0_90, %c0_91, %c0_92] : memref<1x1x384xf32, #tpu.memory_space<vmem>>, vector<1x1x384xf32>
      %129 = vector.shape_cast %128 : vector<1x1x384xf32> to vector<1x384xf32>
      %130 = vector.shape_cast %127 : vector<1x384xf32> to vector<1x1x384xf32>
      tpu.vector_store %arg6[%c0_90, %c0_91, %c0_92], %130 {strides = array<i32>} : memref<1x1x384xf32, #tpu.memory_space<vmem>>, vector<1x1x384xf32>,
    } else {
    }
    return
  }
  func.func @transform_0(%arg0: i32, %arg1: i32) -> (i32, i32, i32, i32) {
    %c0_i32 = arith.constant 0 : i32
    %c0_i32_0 = arith.constant 0 : i32
    %c0_i32_1 = arith.constant 0 : i32
    return %arg0, %arg1, %c0_i32, %c0_i32_0 : i32, i32, i32, i32
  }
  func.func @transform_1(%arg0: i32, %arg1: i32) -> (i32, i32) {
    %c0_i32 = arith.constant 0 : i32
    %c0_i32_0 = arith.constant 0 : i32
    %c0_i32_1 = arith.constant 0 : i32
    return %c0_i32, %c0_i32_0 : i32, i32
  }
  func.func @transform_2(%arg0: i32, %arg1: i32) -> (i32, i32) {
    %c0_i32 = arith.constant 0 : i32
    %c0_i32_0 = arith.constant 0 : i32
    %c0_i32_1 = arith.constant 0 : i32
    return %c0_i32, %c0_i32_0 : i32, i32
  }
  func.func @transform_3(%arg0: i32, %arg1: i32) -> (i32, i32) {
    %c0_i32 = arith.constant 0 : i32
    %c0_i32_0 = arith.constant 0 : i32
    %c0_i32_1 = arith.constant 0 : i32
    return %c0_i32, %c0_i32_0 : i32, i32
  }
  func.func @transform_4(%arg0: i32, %arg1: i32) -> (i32, i32, i32) {
    %c0_i32 = arith.constant 0 : i32
    %c0_i32_0 = arith.constant 0 : i32
    %c0_i32_1 = arith.constant 0 : i32
    return %arg0, %c0_i32, %c0_i32_0 : i32, i32, i32
  }
}

</mosaic_0001>

<bundles_post_ra>
// kernel: pixel_view_weight.1
= control target key start
LH: loop header
LB: loop body
LE: loop exit
PB: predicated region body
PF: predicated region fallthrough
CT: control target
= control target key end

     0   :  { %s2388_s17 = smov 0   ;;  %s2390_s18 = smov 0   ;;  %s2995_s0 = inlined_call_operand.vmem [shape: bf16[2,8,8,512], index: 0, kind: input, shape index: {}]   ;;  %s2996_s1 = inlined_call_operand.vmem [shape: f32[16,72], index: 1, kind: input, shape index: {}]   ;;  %s2997_s2 = inlined_call_operand.vmem [shape: f32[16,1], index: 2, kind: input, shape index: {}]   ;;  %s2998_s3 = inlined_call_operand.<no memory space> [shape: f32[1,1], index: 3, kind: input, shape index: {}]   ;;  %s2999_s4 = inlined_call_operand.vmem [shape: f32[2,1,384], index: 4, kind: output, shape index: {}]  }
   0x1   :  { %9 = sst [smem:[#allocation5]] %s2998_s3  ;;  %s2392_s19 = smov 0  }
   0x2   :  { %s2394_s20 = smov 0   ;;  %s2396_s21 = smov 0  }
   0x3 LB: > { %s24_s3 = sadd.s32 1, %s2338_s19  ;;  %s27_s22 = sadd.s32 1, %s2342_s20  ;;  %s2346_s21 = sphi %s2396_s21, %s15_s21   ;;  %s2342_s20 = sphi %s2394_s20, %s3005_s20   ;;  %s2338_s19 = sphi %s2392_s19, %s3004_s19   ;;  %s2334_s18 = sphi %s2390_s18, %s3003_s18   ;;  %s2330_s17 = sphi %s2388_s17, %s3002_s17  }
   0x4   : > { %p25_p0 = scmp.ge.s32.totalorder %s24_s3, 2  ;;  %p1881_p1 = scmp.ge.s32.totalorder %s2346_s21, 1 }
   0x5   : > { %p183_p2 = scmp.lt.s32.totalorder %s2346_s21, 5 }
   0x6   : > { %s3007_s3 = smov (%p25_p0, %s24_s3), 0  ;;  %s3009_s22 = smov (!%p25_p0, %s27_s22), %s2342_s20 }
   0x7   : > { %p184_p3 = pnand %p1881_p1, %p183_p2  ;;  %p29_p4 = scmp.ge.s32.totalorder %s3009_s22, 2 }
   0x8   : > { %s1882_s23 = sshll.u32 (!%p184_p3), %s2330_s17, 2  ;;  %p214_p5 = scmp.lt.s32.totalorder (!%p184_p3), %s2334_s18, 1 }
   0x9   : > { %s3011_s22 = smov (%p29_p4, %s3009_s22), 0  ;;  %187 = sbr.rel (%p184_p3) target bundleno = 618 (0x26a), region = 36 }
   0xa   : > { %p216_p6 = scmp.lt.s32.totalorder (!%p184_p3), %s1882_s23, 7  ;;  %s2348_s9 = smov (!%p184_p3), 90  }
   0xb   : > { %s2349_s10 = smov (!%p184_p3), 91   ;;  %s2350_s11 = smov (!%p184_p3), 92  }
   0xc   : > { %s2351_s12 = smov (!%p184_p3), 108   ;;  %s2352_s13 = smov (!%p184_p3), 109  }
   0xd   : > { %s2353_s14 = smov (!%p184_p3), 110   ;;  %s2354_s15 = smov (!%p184_p3), 126  }
   0xe   : > { %s3013_s18 = smov (!%p214_p5, %s2334_s18), 1  ;;  %s3015_s23 = smov (!%p216_p6, %s1882_s23), 7  ;;  %v2355_v15 = vmov 0.0   ;;  %vm375_vm0 = vcmask 736256   ;;  %vm357_vm1 = vcmask 744448   ;;  %vm339_vm2 = vcmask 752640  }
   0xf   : > { %s1884_s24 = sshll.u32 %s3013_s18, 5  ;;  %s1909_s25 = smul.u32 3, %s3013_s18  ;;  %1016 = vmatprep.mubr.f32.mxu0 %v2355_v15  ;;  %1093 = vmatprep.mubr.f32.mxu1 %v2355_v15  ;;  %vm321_vm3 = vcmask 883712   ;;  %vm303_vm4 = vcmask 891904   ;;  %vm285_vm5 = vcmask 900096   ;;  %vm267_vm6 = vcmask 1031168  }
  0x10   : > { %s1883_s26 = sshll.u32 %s3015_s23, 2  ;;  %s2356_s16 = smov 127   ;;  %vm249_vm7 = vcmask 1039360   ;;  %vm945_vm8 = vcmask 588800  }
  0x11   : > { %s220_s27 = sadd.s32 %s1884_s24, %s1883_s26  ;;  %s2424_s30 = scalar_lea.vmem %s2999_s4, %s1909_s25 }
  0x12   : > { %s1885_s5 = sshll.u32 %s220_s27, 2  ;;  %p1904_p7 = scmp.ne.s32.totalorder %s2330_s17, 0 }
  0x13   : > { %s2429_s8 = scalar_lea.vmem %s2995_s0, %s1885_s5  ;;  %s1558_s5 = sld [smem:[#allocation5]] }
  0x14   : > { %v2432_v0 = vld [vmem:[%s2429_s8] sm:$0xff]  ;;  %v2435_v1 = vld [vmem:[%s2429_s8 + $0x8] sm:$0xff]  ;;  %v2438_v2 = vld [vmem:[%s2429_s8 + $0x10] sm:$0xff] }
  0x15   : > { %v231_v3 = vunpack.c.h.bf16 %v2432_v0  ;;  %v232_v4 = vunpack.c.l.bf16 %v2435_v1  ;;  %v230_v5 = vunpack.c.l.bf16 %v2432_v0  ;;  %v233_v6 = vunpack.c.h.bf16 %v2435_v1  ;;  %v2477_v12 = vld [vmem:[%s2429_s8 + $0x18] sm:$0xff]  ;;  %v2480_v13 = vld [vmem:[%s2429_s8 + $0x20] sm:$0xff]  ;;  %v2483_v14 = vld [vmem:[%s2429_s8 + $0x28] sm:$0xff] }
  0x16   : > { %v388_v7 = vunpack.c.l.bf16 %v2438_v2  ;;  %v389_v8 = vunpack.c.h.bf16 %v2438_v2  ;;  %v390_v16 = vunpack.c.l.bf16 %v2477_v12  ;;  %v391_v17 = vunpack.c.h.bf16 %v2477_v12  ;;  %v1890_v20 = vld [vmem:[%s2429_s8 + $0x30] sm:$0xff]  ;;  %v1891_v26 = vld [vmem:[%s2429_s8 + $0x38] sm:$0xff] }
  0x17   : > { %v1962_v9 = vpack.i.bf16 %v232_v4, %v231_v3  ;;  %v1972_v10 = vpack.i.bf16 %v233_v6, %v230_v5  ;;  %v539_v18 = vunpack.c.h.bf16 %v2480_v13  ;;  %v540_v19 = vunpack.c.l.bf16 %v2483_v14 }
  0x18   : > { %v1967_v11 = vpack.i.bf16 %v389_v8, %v388_v7  ;;  %v2082_v21 = vpack.i.bf16 %v391_v17, %v390_v16  ;;  %v2503_v23 = vunpack.c.l.bf16 %v2480_v13  ;;  %v2505_v24 = vunpack.c.l.bf16 %v1890_v20 }
  0x19   : > { %1963 = vrot.lane.b32.xlu0 %v1962_v9, %s2348_s9  ;;  %1973 = vrot.lane.b32.xlu1 %v1972_v10, %s2348_s9  ;;  %v2087_v22 = vpack.i.bf16 %v540_v19, %v539_v18  ;;  %v2530_v27 = vunpack.c.h.bf16 %v1890_v20  ;;  %v2535_v28 = vunpack.c.l.bf16 %v1891_v26  ;;  %v2538_v29 = vunpack.c.h.bf16 %v2483_v14 }
  0x1a   : > { %v2092_v25 = vpack.i.bf16 %v2505_v24, %v2503_v23  ;;  %v691_v30 = vunpack.c.h.bf16 %v1891_v26 }
  0x1b   : > { %v2192_v31 = vpack.i.bf16 %v2535_v28, %v2530_v27  ;;  %v2252_v38 = vpack.i.bf16 %v2530_v27, %v2505_v24 }
  0x1c   : > { %v2197_v32 = vpack.i.bf16 %v2538_v29, %v691_v30  ;;  %v2257_v39 = vpack.i.bf16 %v691_v30, %v2535_v28 }
  0x1d   : > { %1968 = vrot.lane.b32.xlu0 %v1967_v11, %s2348_s9  ;;  %1978 = vrot.lane.b32.xlu1 %v1962_v9, %s2349_s10 }
  0x21   : > { %1983 = vrot.lane.b32.xlu0 %v1967_v11, %s2349_s10  ;;  %1988 = vrot.lane.b32.xlu1 %v1972_v10, %s2349_s10 }
  0x25   : > { %1993 = vrot.lane.b32.xlu0 %v1962_v9, %s2350_s11  ;;  %1998 = vrot.lane.b32.xlu1 %v1967_v11, %s2350_s11 }
  0x29   : > { %2003 = vrot.lane.b32.xlu0 %v1972_v10, %s2350_s11  ;;  %2008 = vrot.lane.b32.xlu1 %v1962_v9, %s2351_s12 }
  0x2d   : > { %2013 = vrot.lane.b32.xlu0 %v1967_v11, %s2351_s12  ;;  %2018 = vrot.lane.b32.xlu1 %v1972_v10, %s2351_s12 }
  0x31   : > { %2023 = vrot.lane.b32.xlu0 %v1962_v9, %s2352_s13  ;;  %2028 = vrot.lane.b32.xlu1 %v1967_v11, %s2352_s13 }
  0x35   : > { %2033 = vrot.lane.b32.xlu0 %v1972_v10, %s2352_s13  ;;  %2038 = vrot.lane.b32.xlu1 %v1962_v9, %s2353_s14 }
  0x39   : > { %2043 = vrot.lane.b32.xlu0 %v1967_v11, %s2353_s14  ;;  %2048 = vrot.lane.b32.xlu1 %v1972_v10, %s2353_s14 }
  0x3d   : > { %2053 = vrot.lane.b32.xlu0 %v1962_v9, %s2354_s15  ;;  %2058 = vrot.lane.b32.xlu1 %v1967_v11, %s2354_s15 }
  0x41   : > { %2063 = vrot.lane.b32.xlu0 %v1972_v10, %s2354_s15  ;;  %2068 = vrot.lane.b32.xlu1 %v1962_v9, %s2356_s16 }
  0x45   : > { %2073 = vrot.lane.b32.xlu0 %v1967_v11, %s2356_s16  ;;  %2078 = vrot.lane.b32.xlu1 %v1972_v10, %s2356_s16  ;;  %v2357_v11 = vmov 0  }
  0x46   : > { %2273 = vset.pattern.permute.xlu1 %v2357_v11  ;;  %2272 = vset.pattern.permute.xlu0 %v2357_v11 }
  0x49   : > { %2083 = vrot.lane.b32.xlu0 %v2082_v21, %s2348_s9  ;;  %2088 = vrot.lane.b32.xlu1 %v2087_v22, %s2348_s9 }
  0x4d   : > { %2093 = vrot.lane.b32.xlu0 %v2092_v25, %s2348_s9  ;;  %2098 = vrot.lane.b32.xlu1 %v2082_v21, %s2349_s10 }
  0x51   : > { %2103 = vrot.lane.b32.xlu0 %v2087_v22, %s2349_s10  ;;  %2108 = vrot.lane.b32.xlu1 %v2092_v25, %s2349_s10 }
  0x55   : > { %2113 = vrot.lane.b32.xlu0 %v2082_v21, %s2350_s11  ;;  %2118 = vrot.lane.b32.xlu1 %v2087_v22, %s2350_s11 }
  0x59   : > { %2123 = vrot.lane.b32.xlu0 %v2092_v25, %s2350_s11  ;;  %2128 = vrot.lane.b32.xlu1 %v2082_v21, %s2351_s12 }
  0x5d   : > { %2133 = vrot.lane.b32.xlu0 %v2087_v22, %s2351_s12  ;;  %2138 = vrot.lane.b32.xlu1 %v2092_v25, %s2351_s12 }
  0x61   : > { %2143 = vrot.lane.b32.xlu0 %v2082_v21, %s2352_s13  ;;  %2148 = vrot.lane.b32.xlu1 %v2087_v22, %s2352_s13 }
  0x65   : > { %2153 = vrot.lane.b32.xlu0 %v2092_v25, %s2352_s13  ;;  %2158 = vrot.lane.b32.xlu1 %v2082_v21, %s2353_s14 }
  0x69   : > { %2163 = vrot.lane.b32.xlu0 %v2087_v22, %s2353_s14  ;;  %2168 = vrot.lane.b32.xlu1 %v2092_v25, %s2353_s14 }
  0x6d   : > { %2173 = vrot.lane.b32.xlu0 %v2082_v21, %s2354_s15  ;;  %2178 = vrot.lane.b32.xlu1 %v2087_v22, %s2354_s15 }
  0x71   : > { %566 = vrot.lane.b32.xlu0 %v2503_v23, %s2354_s15  ;;  %2183 = vrot.lane.b32.xlu1 %v2082_v21, %s2356_s16  ;;  %v1438_v21 = vld [vmem:[%s2997_s2] sm:$0xff] }
  0x75   : > { %2188 = vrot.lane.b32.xlu0 %v2087_v22, %s2356_s16  ;;  %549 = vrot.lane.b32.xlu1 %v2503_v23, %s2356_s16  ;;  %v1439_v22 = vld [vmem:[%s2997_s2 + $0x8] sm:$0xff] }
  0x79   : > { %2193 = vrot.lane.b32.xlu0 %v2192_v31, %s2348_s9  ;;  %2198 = vrot.lane.b32.xlu1 %v2197_v32, %s2348_s9 }
  0x7d   : > { %2203 = vrot.lane.b32.xlu0 %v2192_v31, %s2349_s10  ;;  %2208 = vrot.lane.b32.xlu1 %v2197_v32, %s2349_s10 }
  0x81   : > { %2213 = vrot.lane.b32.xlu0 %v2192_v31, %s2350_s11  ;;  %2218 = vrot.lane.b32.xlu1 %v2197_v32, %s2350_s11 }
  0x85   : > { %2223 = vrot.lane.b32.xlu0 %v2192_v31, %s2351_s12  ;;  %2228 = vrot.lane.b32.xlu1 %v2197_v32, %s2351_s12 }
  0x89   : > { %2233 = vrot.lane.b32.xlu0 %v2192_v31, %s2352_s13  ;;  %2238 = vrot.lane.b32.xlu1 %v2197_v32, %s2352_s13 }
  0x8b   : > { %v1964_v33 = vpop.permute.xlu0 %1963  ;;  %v1974_v34 = vpop.permute.xlu1 %1973 }
  0x8c   : > { %v1966_v35 = vunpack.i.h.bf16 %v1964_v33  ;;  %v1965_v36 = vunpack.i.l.bf16 %v1964_v33  ;;  %v1975_v37 = vunpack.i.l.bf16 %v1974_v34  ;;  %v1976_v42 = vunpack.i.h.bf16 %v1974_v34 }
  0x8d   : > { %2243 = vrot.lane.b32.xlu0 %v2192_v31, %s2353_s14  ;;  %2248 = vrot.lane.b32.xlu1 %v2197_v32, %s2353_s14 }
  0x8e   : > { %v377_v40 = vsel %vm375_vm0, %v1965_v36, %v1966_v35  ;;  %v376_v41 = vsel %vm375_vm0, %v1975_v37, %v1965_v36  ;;  %v378_v53 = vsel %vm375_vm0, %v1966_v35, %v1976_v42 }
  0x8f   : > { %v2563_v43 = vpop.permute.xlu0 %1968  ;;  %966 = vmatprep.subr.mxu0 %v377_v40  ;;  %v1979_v44 = vpop.permute.xlu1 %1978 }
  0x90   : > { %v1971_v45 = vunpack.i.h.bf16 %v2563_v43  ;;  %v1970_v46 = vunpack.i.l.bf16 %v2563_v43  ;;  %v1981_v47 = vunpack.i.h.bf16 %v1979_v44  ;;  %v1980_v48 = vunpack.i.l.bf16 %v1979_v44  ;;  %967 = vmatpush1.msra.mxu0 %v376_v41 }
  0x91   : > { %2253 = vrot.lane.b32.xlu0 %v2252_v38, %s2354_s15  ;;  %2258 = vrot.lane.b32.xlu1 %v2257_v39, %s2354_s15 }
  0x92   : > { %v526_v49 = vsel %vm375_vm0, %v1970_v46, %v1971_v45  ;;  %v359_v50 = vsel %vm357_vm1, %v1980_v48, %v1981_v47 }
  0x93   : > { %v2573_v51 = vpop.permute.xlu0 %1983  ;;  %1043 = vmatprep.subr.mxu1 %v526_v49  ;;  %v1989_v52 = vpop.permute.xlu1 %1988  ;;  %968 = vmatprep.subr.mxu0 %v359_v50 }
  0x94   : > { %v1986_v54 = vunpack.i.h.bf16 %v2573_v51  ;;  %v1985_v55 = vunpack.i.l.bf16 %v2573_v51  ;;  %v1991_v56 = vunpack.i.h.bf16 %v1989_v52  ;;  %v1990_v57 = vunpack.i.l.bf16 %v1989_v52  ;;  %1044 = vmatpush1.msra.mxu1 %v378_v53 }
  0x95   : > { %572 = vrot.lane.b32.xlu0 %v2538_v29, %s2354_s15  ;;  %2263 = vrot.lane.b32.xlu1 %v2252_v38, %s2356_s16 }
  0x96   : > { %v358_v58 = vsel %vm357_vm1, %v1990_v57, %v1980_v48  ;;  %v509_v59 = vsel %vm357_vm1, %v1985_v55, %v1986_v54  ;;  %v360_v60 = vsel %vm357_vm1, %v1981_v47, %v1991_v56 }
  0x97   : > { %v1994_v61 = vpop.permute.xlu0 %1993  ;;  %v2586_v62 = vpop.permute.xlu1 %1998  ;;  %969 = vmatpush1.msra.mxu0 %v358_v58  ;;  %1045 = vmatprep.subr.mxu1 %v509_v59 }
  0x98   : > { %v1996_v63 = vunpack.i.h.bf16 %v1994_v61  ;;  %v1995_v6 = vunpack.i.l.bf16 %v1994_v61  ;;  %v2001_v9 = vunpack.i.h.bf16 %v2586_v62  ;;  %v2000_v10 = vunpack.i.l.bf16 %v2586_v62  ;;  %1046 = vmatpush1.msra.mxu1 %v360_v60 }
  0x99   : > { %2268 = vrot.lane.b32.xlu0 %v2257_v39, %s2356_s16  ;;  %555 = vrot.lane.b32.xlu1 %v2538_v29, %s2356_s16 }
  0x9a   : > { %v341_v17 = vsel %vm339_vm2, %v1995_v6, %v1996_v63  ;;  %v492_v20 = vsel %vm339_vm2, %v2000_v10, %v2001_v9 }
  0x9b   : > { %v2004_v25 = vpop.permute.xlu0 %2003  ;;  %v2009_v26 = vpop.permute.xlu1 %2008  ;;  %970 = vmatprep.subr.mxu0 %v341_v17  ;;  %1047 = vmatprep.subr.mxu1 %v492_v20 }
  0x9c   : > { %v2006_v29 = vunpack.i.h.bf16 %v2004_v25  ;;  %v2005_v30 = vunpack.i.l.bf16 %v2004_v25  ;;  %v2011_v31 = vunpack.i.h.bf16 %v2009_v26  ;;  %v2010_v32 = vunpack.i.l.bf16 %v2009_v26 }
  0x9d   : > { %1442 = vperm.xlu0 %2272, %v1438_v21   ;;  %1447 = vperm.xlu1 %2273, %v1439_v22  }
  0x9e   : > { %v340_v33 = vsel %vm339_vm2, %v2005_v30, %v1995_v6  ;;  %v342_v34 = vsel %vm339_vm2, %v1996_v63, %v2006_v29  ;;  %v323_v35 = vsel %vm321_vm3, %v2010_v32, %v2011_v31 }
  0x9f   : > { %v2606_v36 = vpop.permute.xlu0 %2013  ;;  %v2019_v37 = vpop.permute.xlu1 %2018  ;;  %971 = vmatpush1.msra.mxu0 %v340_v33  ;;  %1048 = vmatpush1.msra.mxu1 %v342_v34 }
  0xa0   : > { %v2016_v38 = vunpack.i.h.bf16 %v2606_v36  ;;  %v2015_v39 = vunpack.i.l.bf16 %v2606_v36  ;;  %v2021_v40 = vunpack.i.h.bf16 %v2019_v37  ;;  %v2020_v41 = vunpack.i.l.bf16 %v2019_v37  ;;  %972 = vmatprep.subr.mxu0 %v323_v35 }
  0xa2   : > { %v322_v42 = vsel %vm321_vm3, %v2020_v41, %v2010_v32  ;;  %v475_v44 = vsel %vm321_vm3, %v2015_v39, %v2016_v38  ;;  %v324_v46 = vsel %vm321_vm3, %v2011_v31, %v2021_v40 }
  0xa3   : > { %v2024_v47 = vpop.permute.xlu0 %2023  ;;  %v2615_v48 = vpop.permute.xlu1 %2028  ;;  %973 = vmatpush1.msra.mxu0 %v322_v42  ;;  %1049 = vmatprep.subr.mxu1 %v475_v44 }
  0xa4   : > { %v2026_v49 = vunpack.i.h.bf16 %v2024_v47  ;;  %v2025_v50 = vunpack.i.l.bf16 %v2024_v47  ;;  %v2031_v52 = vunpack.i.h.bf16 %v2615_v48  ;;  %v2030_v53 = vunpack.i.l.bf16 %v2615_v48  ;;  %1050 = vmatpush1.msra.mxu1 %v324_v46 }
  0xa6   : > { %v305_v55 = vsel %vm303_vm4, %v2025_v50, %v2026_v49  ;;  %v458_v56 = vsel %vm303_vm4, %v2030_v53, %v2031_v52 }
  0xa7   : > { %v2034_v57 = vpop.permute.xlu0 %2033  ;;  %v2039_v58 = vpop.permute.xlu1 %2038  ;;  %974 = vmatprep.subr.mxu0 %v305_v55  ;;  %1051 = vmatprep.subr.mxu1 %v458_v56 }
  0xa8   : > { %v2036_v59 = vunpack.i.h.bf16 %v2034_v57  ;;  %v2035_v60 = vunpack.i.l.bf16 %v2034_v57  ;;  %v2041_v61 = vunpack.i.h.bf16 %v2039_v58  ;;  %v2040_v63 = vunpack.i.l.bf16 %v2039_v58 }
  0xaa   : > { %v304_v6 = vsel %vm303_vm4, %v2035_v60, %v2025_v50  ;;  %v306_v10 = vsel %vm303_vm4, %v2026_v49, %v2036_v59  ;;  %v287_v11 = vsel %vm285_vm5, %v2040_v63, %v2041_v61 }
  0xab   : > { %v2626_v17 = vpop.permute.xlu0 %2043  ;;  %v2049_v20 = vpop.permute.xlu1 %2048  ;;  %975 = vmatpush1.msra.mxu0 %v304_v6  ;;  %1052 = vmatpush1.msra.mxu1 %v306_v10 }
  0xac   : > { %v2046_v21 = vunpack.i.h.bf16 %v2626_v17  ;;  %v2045_v22 = vunpack.i.l.bf16 %v2626_v17  ;;  %v2051_v25 = vunpack.i.h.bf16 %v2049_v20  ;;  %v2050_v26 = vunpack.i.l.bf16 %v2049_v20  ;;  %976 = vmatprep.subr.mxu0 %v287_v11 }
  0xae   : > { %v286_v29 = vsel %vm285_vm5, %v2050_v26, %v2040_v63  ;;  %v441_v30 = vsel %vm285_vm5, %v2045_v22, %v2046_v21  ;;  %v288_v31 = vsel %vm285_vm5, %v2041_v61, %v2051_v25  ;;  %v2660_v25 = vld [vmem:[%s2996_s1] sm:$0xff] }
  0xaf   : > { %v2054_v32 = vpop.permute.xlu0 %2053  ;;  %v2635_v33 = vpop.permute.xlu1 %2058  ;;  %977 = vmatpush1.msra.mxu0 %v286_v29  ;;  %1053 = vmatprep.subr.mxu1 %v441_v30 }
  0xb0   : > { %v2056_v34 = vunpack.i.h.bf16 %v2054_v32  ;;  %v2055_v35 = vunpack.i.l.bf16 %v2054_v32  ;;  %v2061_v37 = vunpack.i.h.bf16 %v2635_v33  ;;  %v2060_v39 = vunpack.i.l.bf16 %v2635_v33  ;;  %1054 = vmatpush1.msra.mxu1 %v288_v31 }
  0xb2   : > { %v269_v40 = vsel %vm267_vm6, %v2055_v35, %v2056_v34  ;;  %v424_v41 = vsel %vm267_vm6, %v2060_v39, %v2061_v37 }
  0xb3   : > { %v2064_v42 = vpop.permute.xlu0 %2063  ;;  %v2069_v44 = vpop.permute.xlu1 %2068  ;;  %978 = vmatprep.subr.mxu0 %v269_v40  ;;  %1055 = vmatprep.subr.mxu1 %v424_v41 }
  0xb4   : > { %v2066_v46 = vunpack.i.h.bf16 %v2064_v42  ;;  %v2065_v47 = vunpack.i.l.bf16 %v2064_v42  ;;  %v2071_v49 = vunpack.i.h.bf16 %v2069_v44  ;;  %v2070_v50 = vunpack.i.l.bf16 %v2069_v44 }
  0xb6   : > { %v268_v53 = vsel %vm267_vm6, %v2065_v47, %v2055_v35  ;;  %v270_v55 = vsel %vm267_vm6, %v2056_v34, %v2066_v46  ;;  %v251_v56 = vsel %vm249_vm7, %v2070_v50, %v2071_v49 }
  0xb7   : > { %v2646_v57 = vpop.permute.xlu0 %2073  ;;  %v2079_v58 = vpop.permute.xlu1 %2078  ;;  %979 = vmatpush1.msra.mxu0 %v268_v53  ;;  %1056 = vmatpush1.msra.mxu1 %v270_v55 }
  0xb8   : > { %v2076_v59 = vunpack.i.h.bf16 %v2646_v57  ;;  %v2075_v60 = vunpack.i.l.bf16 %v2646_v57  ;;  %v2081_v61 = vunpack.i.h.bf16 %v2079_v58  ;;  %v2080_v63 = vunpack.i.l.bf16 %v2079_v58  ;;  %980 = vmatprep.subr.mxu0 %v251_v56 }
  0xba   : > { %v250_v6 = vsel %vm249_vm7, %v2080_v63, %v2070_v50  ;;  %v407_v10 = vsel %vm249_vm7, %v2075_v60, %v2076_v59  ;;  %v252_v11 = vsel %vm249_vm7, %v2071_v49, %v2081_v61 }
  0xbb   : > { %v2084_v20 = vpop.permute.xlu0 %2083  ;;  %v2655_v22 = vpop.permute.xlu1 %2088  ;;  %981 = vmatpush1.msra.mxu0 %v250_v6  ;;  %1057 = vmatprep.subr.mxu1 %v407_v10 }
  0xbc   : > { %v2086_v26 = vunpack.i.h.bf16 %v2084_v20  ;;  %v2085_v29 = vunpack.i.l.bf16 %v2084_v20  ;;  %v2091_v30 = vunpack.i.h.bf16 %v2655_v22  ;;  %v2090_v31 = vunpack.i.l.bf16 %v2655_v22  ;;  %1058 = vmatpush1.msra.mxu1 %v252_v11  ;;  %982 = vmatprep.subr.mxu0 %v231_v3 }
  0xbd   : > { %983 = vmatpush1.msra.mxu0 %v230_v5  ;;  %1059 = vmatprep.subr.mxu1 %v388_v7  ;;  %v2686_v7 = vld [vmem:[%s2996_s1 + $0x8] sm:$0xff] }
  0xbe   : > { %v528_v32 = vsel %vm375_vm0, %v2085_v29, %v2086_v26  ;;  %1892 = vmatmul.mubr.msk.f32.vlgmr.msra.gmra.mxu0 %vm945_vm8, %v2660_v25  ;;  %v527_v34 = vsel %vm375_vm0, %v1971_v45, %v2085_v29  ;;  %1060 = vmatpush1.msra.mxu1 %v232_v4  ;;  %v677_v0 = vsel %vm375_vm0, %v2090_v31, %v2091_v30 }
  0xbf   : > { %v2681_v3 = vpop.permute.xlu0 %2093  ;;  %v2099_v5 = vpop.permute.xlu1 %2098  ;;  %1120 = vmatprep.subr.mxu0 %v528_v32  ;;  %1197 = vmatprep.subr.mxu1 %v677_v0 }
  0xc0   : > { %v2095_v43 = vunpack.i.l.bf16 %v2681_v3  ;;  %v2101_v45 = vunpack.i.h.bf16 %v2099_v5  ;;  %v2100_v35 = vunpack.i.l.bf16 %v2099_v5  ;;  %1121 = vmatpush1.msra.mxu0 %v527_v34  ;;  %1894 = vmatmul.mubr.msk.f32.vlgmr.msra.gmra.mxu1 %vm945_vm8, %v2660_v25 }
  0xc1   : > { %1022 = vmatprep.mubr.f32.mxu0 %v2355_v15  ;;  %1099 = vmatprep.mubr.f32.mxu1 %v2355_v15 }
  0xc2   : > { %v511_v1 = vsel %vm357_vm1, %v2100_v35, %v2101_v45  ;;  %v676_v4 = vsel %vm375_vm0, %v2095_v43, %v2090_v31  ;;  %v510_v39 = vsel %vm357_vm1, %v1986_v54, %v2100_v35  ;;  %1893 = vmatmul.mubr.msk.f32.gmra.mxu0 %vm945_vm8, %v2686_v7 }
  0xc3   : > { %v2700_v40 = vpop.permute.xlu0 %2103  ;;  %v2702_v41 = vpop.permute.xlu1 %2108  ;;  %1122 = vmatprep.subr.mxu0 %v511_v1  ;;  %1198 = vmatpush1.msra.mxu1 %v676_v4 }
  0xc4   : > { %v2106_v42 = vunpack.i.h.bf16 %v2700_v40  ;;  %v2105_v44 = vunpack.i.l.bf16 %v2700_v40  ;;  %v2110_v46 = vunpack.i.l.bf16 %v2702_v41  ;;  %1123 = vmatpush1.msra.mxu0 %v510_v39  ;;  %1895 = vmatmul.mubr.msk.f32.gmra.mxu1 %vm945_vm8, %v2686_v7 }
  0xc5   : > { %1170 = vmatprep.mubr.f32.mxu0 %v2355_v15  ;;  %1247 = vmatprep.mubr.f32.mxu1 %v2355_v15 }
  0xc6   : > { %v660_v51 = vsel %vm357_vm1, %v2105_v44, %v2106_v42  ;;  %v659_v54 = vsel %vm357_vm1, %v2110_v46, %v2105_v44 }
  0xc7   : > { %v2114_v47 = vpop.permute.xlu0 %2113  ;;  %v2715_v49 = vpop.permute.xlu1 %2118  ;;  %1199 = vmatprep.subr.mxu1 %v660_v51 }
  0xc8   : > { %v2116_v50 = vunpack.i.h.bf16 %v2114_v47  ;;  %v2115_v53 = vunpack.i.l.bf16 %v2114_v47  ;;  %v2121_v55 = vunpack.i.h.bf16 %v2715_v49  ;;  %v2120_v56 = vunpack.i.l.bf16 %v2715_v49  ;;  %1200 = vmatpush1.msra.mxu1 %v659_v54 }
  0xca   : > { %v494_v58 = vsel %vm339_vm2, %v2115_v53, %v2116_v50  ;;  %v493_v60 = vsel %vm339_vm2, %v2001_v9, %v2115_v53  ;;  %v643_v61 = vsel %vm339_vm2, %v2120_v56, %v2121_v55 }
  0xcb   : > { %v2726_v63 = vpop.permute.xlu0 %2123  ;;  %v2129_v6 = vpop.permute.xlu1 %2128  ;;  %1124 = vmatprep.subr.mxu0 %v494_v58  ;;  %1201 = vmatprep.subr.mxu1 %v643_v61 }
  0xcc   : > { %v2125_v10 = vunpack.i.l.bf16 %v2726_v63  ;;  %v2131_v11 = vunpack.i.h.bf16 %v2129_v6  ;;  %v2130_v20 = vunpack.i.l.bf16 %v2129_v6  ;;  %1125 = vmatpush1.msra.mxu0 %v493_v60 }
  0xce   : > { %v477_v26 = vsel %vm321_vm3, %v2130_v20, %v2131_v11  ;;  %v642_v62 = vsel %vm339_vm2, %v2125_v10, %v2120_v56  ;;  %v476_v9 = vsel %vm321_vm3, %v2016_v38, %v2130_v20 }
  0xcf   : > { %v2734_v29 = vpop.permute.xlu0 %2133  ;;  %v2736_v31 = vpop.permute.xlu1 %2138  ;;  %1126 = vmatprep.subr.mxu0 %v477_v26  ;;  %1202 = vmatpush1.msra.mxu1 %v642_v62 }
  0xd0   : > { %v2136_v32 = vunpack.i.h.bf16 %v2734_v29  ;;  %v2135_v34 = vunpack.i.l.bf16 %v2734_v29  ;;  %v2140_v0 = vunpack.i.l.bf16 %v2736_v31  ;;  %1127 = vmatpush1.msra.mxu0 %v476_v9 }
  0xd2   : > { %v626_v5 = vsel %vm321_vm3, %v2135_v34, %v2136_v32  ;;  %v625_v36 = vsel %vm321_vm3, %v2140_v0, %v2135_v34 }
  0xd3   : > { %v2144_v38 = vpop.permute.xlu0 %2143  ;;  %v2745_v43 = vpop.permute.xlu1 %2148  ;;  %1203 = vmatprep.subr.mxu1 %v626_v5 }
  0xd4   : > { %v2146_v45 = vunpack.i.h.bf16 %v2144_v38  ;;  %v2145_v35 = vunpack.i.l.bf16 %v2144_v38  ;;  %v2151_v1 = vunpack.i.h.bf16 %v2745_v43  ;;  %v2150_v4 = vunpack.i.l.bf16 %v2745_v43  ;;  %1204 = vmatpush1.msra.mxu1 %v625_v36 }
  0xd6   : > { %v460_v39 = vsel %vm303_vm4, %v2145_v35, %v2146_v45  ;;  %v459_v44 = vsel %vm303_vm4, %v2031_v52, %v2145_v35  ;;  %v609_v46 = vsel %vm303_vm4, %v2150_v4, %v2151_v1 }
  0xd7   : > { %v2756_v51 = vpop.permute.xlu0 %2153  ;;  %v2159_v54 = vpop.permute.xlu1 %2158  ;;  %1128 = vmatprep.subr.mxu0 %v460_v39  ;;  %1205 = vmatprep.subr.mxu1 %v609_v46 }
  0xd8   : > { %v2155_v47 = vunpack.i.l.bf16 %v2756_v51  ;;  %v2161_v50 = vunpack.i.h.bf16 %v2159_v54  ;;  %v2160_v53 = vunpack.i.l.bf16 %v2159_v54  ;;  %1129 = vmatpush1.msra.mxu0 %v459_v44 }
  0xda   : > { %v443_v56 = vsel %vm285_vm5, %v2160_v53, %v2161_v50  ;;  %v608_v48 = vsel %vm303_vm4, %v2155_v47, %v2150_v4  ;;  %v442_v52 = vsel %vm285_vm5, %v2046_v21, %v2160_v53 }
  0xdb   : > { %v2764_v58 = vpop.permute.xlu0 %2163  ;;  %v2766_v60 = vpop.permute.xlu1 %2168  ;;  %1130 = vmatprep.subr.mxu0 %v443_v56  ;;  %1206 = vmatpush1.msra.mxu1 %v608_v48 }
  0xdc   : > { %v2166_v61 = vunpack.i.h.bf16 %v2764_v58  ;;  %v2165_v6 = vunpack.i.l.bf16 %v2764_v58  ;;  %v2170_v10 = vunpack.i.l.bf16 %v2766_v60  ;;  %1131 = vmatpush1.msra.mxu0 %v442_v52 }
  0xde   : > { %v592_v11 = vsel %vm285_vm5, %v2165_v6, %v2166_v61  ;;  %v591_v17 = vsel %vm285_vm5, %v2170_v10, %v2165_v6  ;;  %v2111_v10 = vunpack.i.h.bf16 %v2702_v41 }
  0xdf   : > { %v2174_v21 = vpop.permute.xlu0 %2173  ;;  %v2775_v20 = vpop.permute.xlu1 %2178  ;;  %1207 = vmatprep.subr.mxu1 %v592_v11 }
  0xe0   : > { %v2176_v26 = vunpack.i.h.bf16 %v2174_v21  ;;  %v2175_v62 = vunpack.i.l.bf16 %v2174_v21  ;;  %v2181_v9 = vunpack.i.h.bf16 %v2775_v20  ;;  %v2180_v34 = vunpack.i.l.bf16 %v2775_v20  ;;  %1208 = vmatpush1.msra.mxu1 %v591_v17 }
  0xe2   : > { %v426_v0 = vsel %vm267_vm6, %v2175_v62, %v2176_v26  ;;  %v425_v5 = vsel %vm267_vm6, %v2061_v37, %v2175_v62  ;;  %v575_v36 = vsel %vm267_vm6, %v2180_v34, %v2181_v9  ;;  %v2126_v62 = vunpack.i.h.bf16 %v2726_v63 }
  0xe3   : > { %v567_v38 = vpop.permute.xlu0 %566  ;;  %v2184_v45 = vpop.permute.xlu1 %2183  ;;  %1132 = vmatprep.subr.mxu0 %v426_v0  ;;  %1209 = vmatprep.subr.mxu1 %v575_v36 }
  0xe4   : > { %v574_v35 = vsel %vm267_vm6, %v567_v38, %v2180_v34  ;;  %v2186_v4 = vunpack.i.h.bf16 %v2184_v45  ;;  %v2185_v39 = vunpack.i.l.bf16 %v2184_v45  ;;  %1133 = vmatpush1.msra.mxu0 %v425_v5 }
  0xe5   : > { %1210 = vmatpush1.msra.mxu1 %v574_v35 }
  0xe6   : > { %v409_v44 = vsel %vm249_vm7, %v2185_v39, %v2186_v4  ;;  %v408_v33 = vsel %vm249_vm7, %v2076_v59, %v2185_v39  ;;  %v2096_v59 = vunpack.i.h.bf16 %v2681_v3  ;;  %v2141_v4 = vunpack.i.h.bf16 %v2736_v31 }
  0xe7   : > { %v2791_v37 = vpop.permute.xlu0 %2188  ;;  %v550_v46 = vpop.permute.xlu1 %549  ;;  %1134 = vmatprep.subr.mxu0 %v409_v44 }
  0xe8   : > { %v2191_v54 = vunpack.i.h.bf16 %v2791_v37  ;;  %v2190_v47 = vunpack.i.l.bf16 %v2791_v37  ;;  %1135 = vmatpush1.msra.mxu0 %v408_v33 }
  0xe9   : > { %1136 = vmatprep.subr.mxu0 %v390_v16 }
  0xea   : > { %v557_v50 = vsel %vm249_vm7, %v550_v46, %v2190_v47  ;;  %1137 = vmatpush1.msra.mxu0 %v389_v8  ;;  %v558_v57 = vsel %vm249_vm7, %v2190_v47, %v2191_v54 }
  0xeb   : > { %v2194_v53 = vpop.permute.xlu0 %2193  ;;  %v2199_v56 = vpop.permute.xlu1 %2198  ;;  %1896 = vmatmul.mubr.msk.f32.vlgmr.msra.gmra.mxu0 %vm945_vm8, %v2660_v25  ;;  %1211 = vmatprep.subr.mxu1 %v558_v57 }
  0xec   : > { %v2196_v48 = vunpack.i.h.bf16 %v2194_v53  ;;  %v2195_v12 = vunpack.i.l.bf16 %v2194_v53  ;;  %v2201_v16 = vunpack.i.h.bf16 %v2199_v56  ;;  %v2200_v52 = vunpack.i.l.bf16 %v2199_v56  ;;  %1212 = vmatpush1.msra.mxu1 %v557_v50  ;;  %1176 = vmatprep.mubr.f32.mxu0 %v2355_v15 }
  0xed   : > { %1213 = vmatprep.subr.mxu1 %v539_v18 }
  0xee   : > { %1214 = vmatpush1.msra.mxu1 %v2503_v23  ;;  %v826_v2 = vsel %vm375_vm0, %v2096_v59, %v2195_v12  ;;  %v828_v8 = vsel %vm375_vm0, %v2196_v48, %v2200_v52  ;;  %v678_v3 = vsel %vm375_vm0, %v2091_v30, %v2201_v16  ;;  %v827_v6 = vsel %vm375_vm0, %v2195_v12, %v2196_v48 }
  0xef   : > { %v2204_v11 = vpop.permute.xlu0 %2203  ;;  %v2209_v17 = vpop.permute.xlu1 %2208  ;;  %1897 = vmatmul.mubr.msk.f32.gmra.mxu0 %vm945_vm8, %v2686_v7  ;;  %1898 = vmatmul.mubr.msk.f32.vlgmr.msra.gmra.mxu1 %vm945_vm8, %v2660_v25  ;;  %v2156_v59 = vunpack.i.h.bf16 %v2756_v51 }
  0xf0   : > { %v2206_v13 = vunpack.i.h.bf16 %v2204_v11  ;;  %v2205_v18 = vunpack.i.l.bf16 %v2204_v11  ;;  %v2211_v23 = vunpack.i.h.bf16 %v2209_v17  ;;  %v2210_v21 = vunpack.i.l.bf16 %v2209_v17  ;;  %1274 = vmatprep.subr.mxu0 %v826_v2  ;;  %1351 = vmatprep.subr.mxu1 %v828_v8 }
  0xf1   : > { %1275 = vmatpush1.msra.mxu0 %v678_v3  ;;  %1352 = vmatpush1.msra.mxu1 %v827_v6  ;;  %v2171_v8 = vunpack.i.h.bf16 %v2766_v60 }
  0xf2   : > { %1253 = vmatprep.mubr.f32.mxu1 %v2355_v15  ;;  %v809_v22 = vsel %vm357_vm1, %v2111_v10, %v2205_v18  ;;  %v811_v30 = vsel %vm357_vm1, %v2206_v13, %v2210_v21  ;;  %v661_v41 = vsel %vm357_vm1, %v2106_v42, %v2211_v23  ;;  %v810_v26 = vsel %vm357_vm1, %v2205_v18, %v2206_v13 }
  0xf3   : > { %v2214_v34 = vpop.permute.xlu0 %2213  ;;  %v2219_v0 = vpop.permute.xlu1 %2218  ;;  %1899 = vmatmul.mubr.msk.f32.gmra.mxu1 %vm945_vm8, %v2686_v7  ;;  %1276 = vmatprep.subr.mxu0 %v809_v22 }
  0xf4   : > { %v2216_v5 = vunpack.i.h.bf16 %v2214_v34  ;;  %v2215_v36 = vunpack.i.l.bf16 %v2214_v34  ;;  %v2221_v38 = vunpack.i.h.bf16 %v2219_v0  ;;  %v2220_v45 = vunpack.i.l.bf16 %v2219_v0  ;;  %1353 = vmatprep.subr.mxu1 %v811_v30  ;;  %1277 = vmatpush1.msra.mxu0 %v661_v41 }
  0xf5   : > { %1354 = vmatpush1.msra.mxu1 %v810_v26  ;;  %1324 = vmatprep.mubr.f32.mxu0 %v2355_v15 }
  0xf6   : > { %v792_v40 = vsel %vm339_vm2, %v2126_v62, %v2215_v36  ;;  %v794_v42 = vsel %vm339_vm2, %v2216_v5, %v2220_v45  ;;  %v644_v63 = vsel %vm339_vm2, %v2121_v55, %v2221_v38  ;;  %v793_v35 = vsel %vm339_vm2, %v2215_v36, %v2216_v5  ;;  %1401 = vmatprep.mubr.f32.mxu1 %v2355_v15 }
  0xf7   : > { %v2224_v39 = vpop.permute.xlu0 %2223  ;;  %v2229_v44 = vpop.permute.xlu1 %2228  ;;  %1278 = vmatprep.subr.mxu0 %v792_v40  ;;  %1355 = vmatprep.subr.mxu1 %v794_v42 }
  0xf8   : > { %v2226_v33 = vunpack.i.h.bf16 %v2224_v39  ;;  %v2225_v46 = vunpack.i.l.bf16 %v2224_v39  ;;  %v2231_v47 = vunpack.i.h.bf16 %v2229_v44  ;;  %v2230_v50 = vunpack.i.l.bf16 %v2229_v44  ;;  %1279 = vmatpush1.msra.mxu0 %v644_v63  ;;  %1356 = vmatpush1.msra.mxu1 %v793_v35 }
  0xfa   : > { %v775_v49 = vsel %vm321_vm3, %v2141_v4, %v2225_v46  ;;  %v777_v55 = vsel %vm321_vm3, %v2226_v33, %v2230_v50  ;;  %v627_v57 = vsel %vm321_vm3, %v2136_v32, %v2231_v47  ;;  %v776_v31 = vsel %vm321_vm3, %v2225_v46, %v2226_v33 }
  0xfb   : > { %v2234_v53 = vpop.permute.xlu0 %2233  ;;  %v2239_v56 = vpop.permute.xlu1 %2238  ;;  %1280 = vmatprep.subr.mxu0 %v775_v49  ;;  %1357 = vmatprep.subr.mxu1 %v777_v55 }
  0xfc   : > { %v2236_v48 = vunpack.i.h.bf16 %v2234_v53  ;;  %v2235_v12 = vunpack.i.l.bf16 %v2234_v53  ;;  %v2241_v16 = vunpack.i.h.bf16 %v2239_v56  ;;  %v2240_v52 = vunpack.i.l.bf16 %v2239_v56  ;;  %1281 = vmatpush1.msra.mxu0 %v627_v57  ;;  %1358 = vmatpush1.msra.mxu1 %v776_v31 }
  0xfe   : > { %v758_v2 = vsel %vm303_vm4, %v2156_v59, %v2235_v12  ;;  %v760_v29 = vsel %vm303_vm4, %v2236_v48, %v2240_v52  ;;  %v610_v32 = vsel %vm303_vm4, %v2151_v1, %v2241_v16  ;;  %v759_v51 = vsel %vm303_vm4, %v2235_v12, %v2236_v48 }
  0xff   : > { %v2244_v3 = vpop.permute.xlu0 %2243  ;;  %v2249_v6 = vpop.permute.xlu1 %2248  ;;  %1282 = vmatprep.subr.mxu0 %v758_v2  ;;  %1359 = vmatprep.subr.mxu1 %v760_v29 }
 0x100   : > { %v2246_v10 = vunpack.i.h.bf16 %v2244_v3  ;;  %v2245_v11 = vunpack.i.l.bf16 %v2244_v3  ;;  %v2251_v17 = vunpack.i.h.bf16 %v2249_v6  ;;  %v2250_v13 = vunpack.i.l.bf16 %v2249_v6  ;;  %1283 = vmatpush1.msra.mxu0 %v610_v32  ;;  %1360 = vmatpush1.msra.mxu1 %v759_v51 }
 0x102   : > { %v741_v18 = vsel %vm285_vm5, %v2171_v8, %v2245_v11  ;;  %v743_v43 = vsel %vm285_vm5, %v2246_v10, %v2250_v13  ;;  %v593_v1 = vsel %vm285_vm5, %v2166_v61, %v2251_v17  ;;  %v742_v60 = vsel %vm285_vm5, %v2245_v11, %v2246_v10 }
 0x103   : > { %v2254_v23 = vpop.permute.xlu0 %2253  ;;  %v2259_v21 = vpop.permute.xlu1 %2258  ;;  %1284 = vmatprep.subr.mxu0 %v741_v18  ;;  %1361 = vmatprep.subr.mxu1 %v743_v43 }
 0x104   : > { %v2256_v22 = vunpack.i.h.bf16 %v2254_v23  ;;  %v2255_v30 = vunpack.i.l.bf16 %v2254_v23  ;;  %v2261_v41 = vunpack.i.h.bf16 %v2259_v21  ;;  %v2260_v26 = vunpack.i.l.bf16 %v2259_v21  ;;  %1285 = vmatpush1.msra.mxu0 %v593_v1  ;;  %1362 = vmatpush1.msra.mxu1 %v742_v60 }
 0x106   : > { %v724_v62 = vsel %vm267_vm6, %v2255_v30, %v2256_v22  ;;  %v726_v34 = vsel %vm267_vm6, %v2260_v26, %v2261_v41  ;;  %v725_v58 = vsel %vm267_vm6, %v2256_v22, %v2260_v26 }
 0x107   : > { %v573_v0 = vpop.permute.xlu0 %572  ;;  %v2264_v61 = vpop.permute.xlu1 %2263  ;;  %1286 = vmatprep.subr.mxu0 %v724_v62  ;;  %1363 = vmatprep.subr.mxu1 %v726_v34 }
 0x108   : > { %v576_v5 = vsel %vm267_vm6, %v2181_v9, %v573_v0  ;;  %v2266_v36 = vunpack.i.h.bf16 %v2264_v61  ;;  %v2265_v38 = vunpack.i.l.bf16 %v2264_v61  ;;  %1364 = vmatpush1.msra.mxu1 %v725_v58 }
 0x109   : > { %1287 = vmatpush1.msra.mxu0 %v576_v5 }
 0x10a   : > { %v707_v45 = vsel %vm249_vm7, %v2265_v38, %v2266_v36 }
 0x10b   : > { %v2269_v40 = vpop.permute.xlu0 %2268  ;;  %v556_v42 = vpop.permute.xlu1 %555  ;;  %1288 = vmatprep.subr.mxu0 %v707_v45 }
 0x10c   : > { %v2271_v63 = vunpack.i.h.bf16 %v2269_v40  ;;  %v2270_v35 = vunpack.i.l.bf16 %v2269_v40  ;;  %v559_v4 = vsel %vm249_vm7, %v2191_v54, %v556_v42 }
 0x10d   : > { %1289 = vmatpush1.msra.mxu0 %v559_v4 }
 0x10e   : > { %1290 = vmatprep.subr.mxu0 %v2505_v24  ;;  %v709_v20 = vsel %vm249_vm7, %v2270_v35, %v2271_v63  ;;  %v708_v9 = vsel %vm249_vm7, %v2266_v36, %v2270_v35 }
 0x10f   : > { %1291 = vmatpush1.msra.mxu0 %v540_v19  ;;  %1365 = vmatprep.subr.mxu1 %v709_v20 }
 0x110   : > { %1900 = vmatmul.mubr.msk.f32.vlgmr.msra.gmra.mxu0 %vm945_vm8, %v2660_v25  ;;  %1366 = vmatpush1.msra.mxu1 %v708_v9 }
 0x111   : > { %1367 = vmatprep.subr.mxu1 %v2535_v28  ;;  %1330 = vmatprep.mubr.f32.mxu0 %v2355_v15 }
 0x112   : > { %1368 = vmatpush1.msra.mxu1 %v2530_v27 }
 0x113   : > { %1902 = vmatmul.mubr.msk.f32.vlgmr.msra.gmra.mxu1 %vm945_vm8, %v2660_v25 }
 0x114   : > { %1901 = vmatmul.mubr.msk.f32.gmra.mxu0 %vm945_vm8, %v2686_v7  ;;  %1407 = vmatprep.mubr.f32.mxu1 %v2355_v15 }
 0x117   : > { %1903 = vmatmul.mubr.msk.f32.gmra.mxu1 %vm945_vm8, %v2686_v7 }
 0x118   : > { %v2887_v15 = vpop.permute.xlu0 %1442  ;;  %v2889_v57 = vpop.permute.xlu1 %1447 }
 0x17e   : > { %v1018_v14 = vpop.f32.mrf.mxu0 }
 0x17f   : > { %v1414_v50 = vmax.f32 %v1018_v14, 0.0 }
 0x180   : > { %v1095_v19 = vpop.f32.mrf.mxu1  ;;  %v1020_v24 = vpop.f32.mrf.mxu0 }
 0x181   : > { %v1416_v7 = vmax.f32 %v1095_v19, 0.0  ;;  %v1415_v31 = vmax.f32 %v1020_v24, 0.0  ;;  %v1450_v16 = vmul.f32 %v2887_v15, %v1414_v50 }
 0x182   : > { %v1097_v37 = vpop.f32.mrf.mxu1  ;;  %v1024_v28 = vpop.f32.mrf.mxu0 }
 0x183   : > { %v1426_v49 = vmax.f32 %v1024_v28, 0.0  ;;  %v1417_v48 = vmax.f32 %v1097_v37, 0.0  ;;  %v1451_v3 = vmul.f32 %v2887_v15, %v1415_v31  ;;  %v1452_v10 = vmul.f32 %v2887_v15, %v1416_v7 }
 0x184   : > { %v1101_v54 = vpop.f32.mrf.mxu1  ;;  %v1026_v39 = vpop.f32.mrf.mxu0 }
 0x185   : > { %v1428_v53 = vmax.f32 %v1101_v54, 0.0  ;;  %v1427_v56 = vmax.f32 %v1026_v39, 0.0  ;;  %v1462_v52 = vmul.f32 %v2889_v57, %v1426_v49  ;;  %v1453_v1 = vmul.f32 %v2887_v15, %v1417_v48 }
 0x186   : > { %v1103_v44 = vpop.f32.mrf.mxu1 }
 0x187   : > { %v1429_v12 = vmax.f32 %v1103_v44, 0.0  ;;  %v1463_v17 = vmul.f32 %v2889_v57, %v1427_v56  ;;  %v1464_v13 = vmul.f32 %v2889_v57, %v1428_v53  ;;  %v1474_v23 = vadd.f32 %v1462_v52, %v1450_v16 }
 0x188   : > { %v2907_v56 = vstv %s1558_s5 }
 0x189   : > { %v1465_v60 = vmul.f32 %v2889_v57, %v1429_v12  ;;  %v1481_v34 = vadd.f32 %v1463_v17, %v1451_v3  ;;  %v1488_v58 = vadd.f32 %v1464_v13, %v1452_v10  ;;  %v1475_v5 = vrot.slane %v1474_v23, 4 }
 0x18b   : > { %v1495_v36 = vadd.f32 %v1465_v60, %v1453_v1  ;;  %v1482_v42 = vrot.slane %v1481_v34, 4  ;;  %v1489_v63 = vrot.slane %v1488_v58, 4  ;;  %v1476_v4 = vadd.f32 %v1475_v5, %v1474_v23 }
 0x18d   : > { %v1496_v20 = vrot.slane %v1495_v36, 4  ;;  %v1483_v24 = vadd.f32 %v1482_v42, %v1481_v34  ;;  %v1490_v37 = vadd.f32 %v1489_v63, %v1488_v58  ;;  %v1477_v54 = vrot.slane %v1476_v4, 2 }
 0x18f   : > { %v1497_v39 = vadd.f32 %v1496_v20, %v1495_v36  ;;  %v1491_v50 = vrot.slane %v1490_v37, 2  ;;  %v1478_v7 = vadd.f32 %v1477_v54, %v1476_v4 }
 0x191   : > { %v1498_v31 = vrot.slane %v1497_v39, 2 }
 0x193   : > { %v1499_v17 = vadd.f32 %v1498_v31, %v1497_v39 }
 0x195   : > { %v1500_v36 = vrot.slane %v1499_v17, 1 }
 0x197   : > { %v1501_v39 = vadd.f32 %v1500_v36, %v1499_v17 }
 0x1ab   : > { %v1172_v27 = vpop.f32.mrf.mxu0 }
 0x1ac   : > { %v1418_v29 = vmax.f32 %v1172_v27, 0.0 }
 0x1ad   : > { %v1174_v46 = vpop.f32.mrf.mxu0 }
 0x1ae   : > { %v1419_v32 = vmax.f32 %v1174_v46, 0.0  ;;  %v1454_v22 = vmul.f32 %v2887_v15, %v1418_v29 }
 0x1af   : > { %v1249_v33 = vpop.f32.mrf.mxu1  ;;  %v1178_v47 = vpop.f32.mrf.mxu0 }
 0x1b0   : > { %v1430_v51 = vmax.f32 %v1178_v47, 0.0  ;;  %v1420_v6 = vmax.f32 %v1249_v33, 0.0  ;;  %v1455_v21 = vmul.f32 %v2887_v15, %v1419_v32  ;;  %v1484_v47 = vrot.slane %v1483_v24, 2 }
 0x1b1   : > { %v1251_v25 = vpop.f32.mrf.mxu1  ;;  %v1180_v59 = vpop.f32.mrf.mxu0 }
 0x1b2   : > { %v1431_v8 = vmax.f32 %v1180_v59, 0.0  ;;  %v1421_v18 = vmax.f32 %v1251_v25, 0.0  ;;  %v1466_v30 = vmul.f32 %v2889_v57, %v1430_v51  ;;  %v1456_v26 = vmul.f32 %v2887_v15, %v1420_v6 }
 0x1b3   : > { %v1255_v55 = vpop.f32.mrf.mxu1  ;;  %v1485_v51 = vadd.f32 %v1484_v47, %v1483_v24 }
 0x1b4   : > { %v1432_v11 = vmax.f32 %v1255_v55, 0.0  ;;  %v1467_v41 = vmul.f32 %v2889_v57, %v1431_v8  ;;  %v1457_v0 = vmul.f32 %v2887_v15, %v1421_v18  ;;  %v1502_v38 = vadd.f32 %v1466_v30, %v1454_v22 }
 0x1b5   : > { %v1257_v2 = vpop.f32.mrf.mxu1  ;;  %v1492_v8 = vadd.f32 %v1491_v50, %v1490_v37  ;;  %v1486_v5 = vrot.slane %v1485_v51, 1 }
 0x1b6   : > { %v1433_v43 = vmax.f32 %v1257_v2, 0.0  ;;  %v1468_v62 = vmul.f32 %v2889_v57, %v1432_v11  ;;  %v1509_v45 = vadd.f32 %v1467_v41, %v1455_v21  ;;  %v1503_v9 = vrot.slane %v1502_v38, 4 }
 0x1b7   : > { %v1479_v11 = vrot.slane %v1478_v7, 1  ;;  %v1493_v4 = vrot.slane %v1492_v8, 1 }
 0x1b8   : > { %v1469_v61 = vmul.f32 %v2889_v57, %v1433_v43  ;;  %v1516_v40 = vadd.f32 %v1468_v62, %v1456_v26  ;;  %v1510_v14 = vrot.slane %v1509_v45, 4  ;;  %v1504_v44 = vadd.f32 %v1503_v9, %v1502_v38 }
 0x1b9   : > { %v1480_v54 = vadd.f32 %v1479_v11, %v1478_v7 }
 0x1ba   : > { %v1523_v35 = vadd.f32 %v1469_v61, %v1457_v0  ;;  %v1517_v19 = vrot.slane %v1516_v40, 4  ;;  %v1511_v27 = vadd.f32 %v1510_v14, %v1509_v45  ;;  %v1505_v53 = vrot.slane %v1504_v44, 2 }
 0x1bc   : > { %v1524_v28 = vrot.slane %v1523_v35, 4  ;;  %v1518_v46 = vadd.f32 %v1517_v19, %v1516_v40  ;;  %v1512_v48 = vrot.slane %v1511_v27, 2  ;;  %v1506_v1 = vadd.f32 %v1505_v53, %v1504_v44 }
 0x1be   : > { %v1525_v49 = vadd.f32 %v1524_v28, %v1523_v35  ;;  %v1519_v16 = vrot.slane %v1518_v46, 2  ;;  %v1513_v60 = vadd.f32 %v1512_v48, %v1511_v27  ;;  %v1507_v40 = vrot.slane %v1506_v1, 1 }
 0x1bf   : > { %v1560_v48 = vadd.f32 %v2907_v56, %v1480_v54 }
 0x1c0   : > { %v1526_v3 = vrot.slane %v1525_v49, 2  ;;  %v1520_v22 = vadd.f32 %v1519_v16, %v1518_v46  ;;  %v1514_v19 = vrot.slane %v1513_v60, 1  ;;  %v1508_v46 = vadd.f32 %v1507_v40, %v1506_v1 }
 0x1c2   : > { %v1527_v34 = vadd.f32 %v1526_v3, %v1525_v49  ;;  %v1521_v20 = vrot.slane %v1520_v22, 1 }
 0x1c4   : > { %v1528_v24 = vrot.slane %v1527_v34, 1  ;;  %v1522_v50 = vadd.f32 %v1521_v20, %v1520_v22 }
 0x1c6   : > { %v1529_v31 = vadd.f32 %v1528_v24, %v1527_v34 }
 0x1d0   : > { %v1326_v33 = vpop.f32.mrf.mxu0 }
 0x1d1   : > { %v1422_v25 = vmax.f32 %v1326_v33, 0.0  ;;  %v1487_v33 = vadd.f32 %v1486_v5, %v1485_v51  ;;  %v1566_v51 = vadd.f32 %v2907_v56, %v1522_v50 }
 0x1d2   : > { %v1328_v55 = vpop.f32.mrf.mxu0 }
 0x1d3   : > { %v1403_v59 = vpop.f32.mrf.mxu1  ;;  %v1458_v52 = vmul.f32 %v2887_v15, %v1422_v25  ;;  %v1423_v2 = vmax.f32 %v1328_v55, 0.0  ;;  %v1515_v55 = vadd.f32 %v1514_v19, %v1513_v60 }
 0x1d4   : > { %v1332_v12 = vpop.f32.mrf.mxu0  ;;  %v1424_v6 = vmax.f32 %v1403_v59, 0.0 }
 0x1d5   : > { %v1434_v29 = vmax.f32 %v1332_v12, 0.0  ;;  %v1405_v32 = vpop.f32.mrf.mxu1  ;;  %v1459_v30 = vmul.f32 %v2887_v15, %v1423_v2  ;;  %v1563_v12 = vadd.f32 %v2907_v56, %v1501_v39 }
 0x1d6   : > { %v1334_v10 = vpop.f32.mrf.mxu0  ;;  %v1425_v23 = vmax.f32 %v1405_v32, 0.0  ;;  %v1460_v58 = vmul.f32 %v2887_v15, %v1424_v6  ;;  %v1561_v32 = vadd.f32 %v2907_v56, %v1487_v33  ;;  %v1565_v6 = vadd.f32 %v2907_v56, %v1515_v55 }
 0x1d7   : > { %v1470_v13 = vmul.f32 %v2889_v57, %v1434_v29  ;;  %v1435_v18 = vmax.f32 %v1334_v10, 0.0  ;;  %v1409_v43 = vpop.f32.mrf.mxu1  ;;  %v1567_v10 = vadd.f32 %v2907_v56, %v1529_v31 }
 0x1d8   : > { %v1436_v21 = vmax.f32 %v1409_v43, 0.0  ;;  %v1461_v42 = vmul.f32 %v2887_v15, %v1425_v23  ;;  %v1494_v15 = vadd.f32 %v1493_v4, %v1492_v8 }
 0x1d9   : > { %v1530_v41 = vadd.f32 %v1470_v13, %v1458_v52  ;;  %v1471_v26 = vmul.f32 %v2889_v57, %v1435_v18  ;;  %v1411_v62 = vpop.f32.mrf.mxu1  ;;  %v1564_v52 = vadd.f32 %v2907_v56, %v1508_v46  ;;  %v1572_v18 = vmax.f32 %v1560_v48, %v1563_v12 }
 0x1da   : > { %v1472_v0 = vmul.f32 %v2889_v57, %v1436_v21  ;;  %v1437_v61 = vmax.f32 %v1411_v62, 0.0  ;;  %v1562_v13 = vadd.f32 %v2907_v56, %v1494_v15 }
 0x1db   : > { %v1531_v38 = vrot.slane %v1530_v41, 4  ;;  %v1537_v45 = vadd.f32 %v1471_v26, %v1459_v30  ;;  %v1573_v1 = vmax.f32 %v1561_v32, %v1564_v52  ;;  %v1575_v22 = vmax.f32 %v1572_v18, %v1566_v51 }
 0x1dc   : > { %v1544_v63 = vadd.f32 %v1472_v0, %v1460_v58  ;;  %v1473_v35 = vmul.f32 %v2889_v57, %v1437_v61 }
 0x1dd   : > { %v1532_v9 = vadd.f32 %v1531_v38, %v1530_v41  ;;  %v1538_v14 = vrot.slane %v1537_v45, 4  ;;  %v1574_v41 = vmax.f32 %v1562_v13, %v1565_v6  ;;  %v1576_v26 = vmax.f32 %v1573_v1, %v1567_v10 }
 0x1de   : > { %v1545_v37 = vrot.slane %v1544_v63, 4  ;;  %v1551_v28 = vadd.f32 %v1473_v35, %v1461_v42 }
 0x1df   : > { %v1533_v44 = vrot.slane %v1532_v9, 2  ;;  %v1539_v27 = vadd.f32 %v1538_v14, %v1537_v45 }
 0x1e0   : > { %v1546_v25 = vadd.f32 %v1545_v37, %v1544_v63  ;;  %v1552_v47 = vrot.slane %v1551_v28, 4 }
 0x1e1   : > { %v1534_v49 = vadd.f32 %v1533_v44, %v1532_v9  ;;  %v1540_v57 = vrot.slane %v1539_v27, 2 }
 0x1e2   : > { %v1547_v59 = vrot.slane %v1546_v25, 2  ;;  %v1553_v53 = vadd.f32 %v1552_v47, %v1551_v28 }
 0x1e3   : > { %v1535_v7 = vrot.slane %v1534_v49, 1  ;;  %v1541_v16 = vadd.f32 %v1540_v57, %v1539_v27 }
 0x1e4   : > { %v1548_v2 = vadd.f32 %v1547_v59, %v1546_v25  ;;  %v1554_v29 = vrot.slane %v1553_v53, 2 }
 0x1e5   : > { %v1536_v8 = vadd.f32 %v1535_v7, %v1534_v49  ;;  %v1542_v3 = vrot.slane %v1541_v16, 1 }
 0x1e6   : > { %v1549_v11 = vrot.slane %v1548_v2, 1  ;;  %v1555_v17 = vadd.f32 %v1554_v29, %v1553_v53 }
 0x1e7   : > { %v1543_v43 = vadd.f32 %v1542_v3, %v1541_v16  ;;  %v1568_v60 = vadd.f32 %v2907_v56, %v1536_v8 }
 0x1e8   : > { %v1550_v23 = vadd.f32 %v1549_v11, %v1548_v2  ;;  %v1556_v21 = vrot.slane %v1555_v17, 1 }
 0x1e9   : > { %v1569_v30 = vadd.f32 %v2907_v56, %v1543_v43  ;;  %v1577_v0 = vmax.f32 %v1574_v41, %v1568_v60 }
 0x1ea   : > { %v1570_v62 = vadd.f32 %v2907_v56, %v1550_v23  ;;  %v1557_v34 = vadd.f32 %v1556_v21, %v1555_v17 }
 0x1eb   : > { %v2928_v58 = vmax.f32 %v1575_v22, %v1569_v30 }
 0x1ec   : > { %v2930_v61 = vmax.f32 %v1576_v26, %v1570_v62  ;;  %v1571_v5 = vadd.f32 %v2907_v56, %v1557_v34 }
 0x1ed   : > { %v1581_v36 = vsub.f32 %v1560_v48, %v2928_v58  ;;  %v1593_v38 = vsub.f32 %v1563_v12, %v2928_v58  ;;  %v1605_v45 = vsub.f32 %v1566_v51, %v2928_v58  ;;  %v1617_v40 = vsub.f32 %v1569_v30, %v2928_v58 }
 0x1ee   : > { %v1582_v42 = vsub.f32 %v1561_v32, %v2930_v61  ;;  %v1594_v63 = vsub.f32 %v1564_v52, %v2930_v61  ;;  %v1606_v35 = vsub.f32 %v1567_v10, %v2930_v61  ;;  %v2940_v14 = vmax.f32 %v1577_v0, %v1571_v5 }
 0x1ef   : > { %v1584_v4 = vmul.f32 1.442695, %v1581_v36  ;;  %v1596_v20 = vmul.f32 1.442695, %v1593_v38  ;;  %v1608_v9 = vmul.f32 1.442695, %v1605_v45  ;;  %v1618_v19 = vsub.f32 %v1570_v62, %v2930_v61 }
 0x1f0   : > { %v1620_v56 = vmul.f32 1.442695, %v1617_v40  ;;  %v1586_v24 = vmul.f32 1.442695, %v1582_v42  ;;  %v1583_v37 = vsub.f32 %v1562_v13, %v2940_v14  ;;  %v1598_v28 = vmul.f32 1.442695, %v1594_v63 }
 0x1f1   : > { %2274 = vpow2.f32 %v1584_v4  ;;  %v1595_v54 = vsub.f32 %v1565_v6, %v2940_v14  ;;  %v1610_v39 = vmul.f32 1.442695, %v1606_v35  ;;  %v1622_v44 = vmul.f32 1.442695, %v1618_v19 }
 0x1f2   : > { %2276 = vpow2.f32 %v1596_v20  ;;  %v1607_v27 = vsub.f32 %v1568_v60, %v2940_v14  ;;  %v1588_v33 = vmul.f32 1.442695, %v1583_v37  ;;  %v1619_v25 = vsub.f32 %v1571_v5, %v2940_v14 }
 0x1f3   : > { %2278 = vpow2.f32 %v1608_v9  ;;  %v1600_v46 = vmul.f32 1.442695, %v1595_v54 }
 0x1f4   : > { %2280 = vpow2.f32 %v1620_v56  ;;  %v1612_v47 = vmul.f32 1.442695, %v1607_v27  ;;  %v1624_v15 = vmul.f32 1.442695, %v1619_v25 }
 0x1f5   : > { %2282 = vpow2.f32 %v1586_v24 }
 0x1f6   : > { %2284 = vpow2.f32 %v1598_v28 }
 0x1f7   : > { %2286 = vpow2.f32 %v1610_v39 }
 0x1f8   : > { %2288 = vpow2.f32 %v1622_v44 }
 0x1f9   : > { %2290 = vpow2.f32 %v1588_v33 }
 0x1fa   : > { %2292 = vpow2.f32 %v1600_v46 }
 0x1fb   : > { %2294 = vpow2.f32 %v1612_v47 }
 0x1fc   : > { %2296 = vpow2.f32 %v1624_v15 }
 0x1fe   : > { %v2275_v50 = vpop.eup %2274 }
 0x1ff   : > { %v2277_v49 = vpop.eup %2276 }
 0x200   : > { %v2279_v57 = vpop.eup %2278  ;;  %v1602_v55 = vadd.f32 %v2277_v49, %v2275_v50 }
 0x201   : > { %v2281_v31 = vpop.eup %2280 }
 0x202   : > { %v2283_v59 = vpop.eup %2282  ;;  %v1614_v53 = vadd.f32 %v2279_v57, %v1602_v55 }
 0x203   : > { %v2285_v48 = vpop.eup %2284 }
 0x204   : > { %v2287_v12 = vpop.eup %2286  ;;  %v2947_v7 = vadd.f32 %v2281_v31, %v1614_v53  ;;  %v1603_v16 = vadd.f32 %v2285_v48, %v2283_v59 }
 0x205   : > { %v2289_v52 = vpop.eup %2288 }
 0x206   : > { %v2291_v2 = vpop.eup %2290  ;;  %v1615_v29 = vadd.f32 %v2287_v12, %v1603_v16 }
 0x207   : > { %v2293_v32 = vpop.eup %2292 }
 0x208   : > { %v2949_v51 = vadd.f32 %v2289_v52, %v1615_v29  ;;  %v1604_v8 = vadd.f32 %v2293_v32, %v2291_v2  ;;  %v2295_v3 = vpop.eup %2294  ;;  %1632 = sbr.rel (%p1904_p7) target bundleno = 539 (0x21b), region = 40 }
 0x209   : > { %v2297_v10 = vpop.eup %2296 }
 0x20a   : > { %v1616_v6 = vadd.f32 %v2295_v3, %v1604_v8 }
 0x20c   : > { %v2951_v11 = vadd.f32 %v2297_v10, %v1616_v6 }
 0x20d   : > { %v1640_v17 = vlaneseq  ;;  %v2358_v13 = vmov 1966171168   ;;  %v1636_v1 = vcombine.low %v2928_v58, %v2930_v61  ;;  %v1668_v23 = vcombine.low %v2947_v7, %v2949_v51 }
 0x20e   : > { %v1638_v18 = vunpack.c.l.s4 %v2358_v13 }
 0x20f   : > { %v1641_v43 = vshrl.u32 %v1640_v17, 7  ;;  %vm1662_vm9 = vcmp.lt.s32.totalorder %v1640_v17, 384 }
 0x210   : > { %v1639_v60 = vunpack.c.0.s8 %v1638_v18 }
 0x212   : > { %v1642_v21 = vsub.s32 %v1639_v60, %v1641_v43 }
 0x214   : > { %v1643_v22 = vrot.slane %v1636_v1, %v1642_v21  ;;  %v1650_v30 = vrot.slane %v2940_v14, %v1642_v21  ;;  %v1675_v41 = vrot.slane %v1668_v23, %v1642_v21  ;;  %v1682_v26 = vrot.slane %v2951_v11, %v1642_v21 }
 0x216   : > { %v1651_v62 = vcombine.low %v1643_v22, %v1650_v30  ;;  %v1683_v34 = vcombine.low %v1675_v41, %v1682_v26 }
 0x218   : > { %v1658_v0 = vrot.slane %v1651_v62, %v1642_v21  ;;  %v1690_v5 = vrot.slane %v1683_v34, %v1642_v21 }
 0x21a   : > { %1664 = vst.msk [vmem:[#allocation3] sm:$0x7] %vm1662_vm9, %v1658_v0  ;;  %1692 = vst.msk [vmem:[#allocation4] sm:$0x7] %vm1662_vm9, %v1690_v5 }
 0x21b PF: > { %p1905_p8 = scmp.le.s32.totalorder %s2330_s17, 0 }
 0x21d   : > { %1696 = sbr.rel (%p1905_p8) target bundleno = 595 (0x253), region = 44 }
 0x222   : > { %v1705_v36 = vlaneseq  ;;  %v2359_v38 = vmov 1966171168   ;;  %v1701_v42 = vcombine.low %v2928_v58, %v2930_v61  ;;  %v1697_v56 = vld [vmem:[#allocation3] sm:$0x7]  ;;  %v1726_v16 = vld [vmem:[#allocation4] sm:$0x7] }
 0x223   : > { %v1703_v45 = vunpack.c.l.s4 %v2359_v38 }
 0x224   : > { %v1706_v40 = vshrl.u32 %v1705_v36, 7  ;;  %vm2964_vm10 = vcmp.lt.s32.totalorder %v1705_v36, 384 }
 0x225   : > { %v1704_v63 = vunpack.c.0.s8 %v1703_v45 }
 0x226   : > { %v1734_v24 = vsub.s32 0, %v1706_v40  ;;  %v1738_v37 = vsub.s32 1, %v1706_v40  ;;  %v1742_v28 = vsub.s32 2, %v1706_v40 }
 0x227   : > { %v1707_v35 = vsub.s32 %v1704_v63, %v1706_v40 }
 0x229   : > { %v1708_v4 = vrot.slane %v1701_v42, %v1707_v35  ;;  %v1715_v20 = vrot.slane %v2940_v14, %v1707_v35 }
 0x22b   : > { %v1716_v9 = vcombine.low %v1708_v4, %v1715_v20 }
 0x22d   : > { %v1723_v19 = vrot.slane %v1716_v9, %v1707_v35 }
 0x22f   : > { %v1725_v39 = vmax.f32 %v1697_v56, %v1723_v19 }
 0x231   : > { %v1735_v44 = vrot.slane %v1725_v39, %v1734_v24  ;;  %v1739_v27 = vrot.slane %v1725_v39, %v1738_v37  ;;  %v1743_v33 = vrot.slane %v1725_v39, %v1742_v28  ;;  %1792 = vst.msk [vmem:[#allocation3] sm:$0x7] %vm2964_vm10, %v1725_v39  ;;  %v1727_v15 = vsub.f32 %v1697_v56, %v1725_v39 }
 0x233   : > { %v1747_v46 = vsub.f32 %v2928_v58, %v1735_v44  ;;  %v1748_v25 = vsub.f32 %v2930_v61, %v1739_v27  ;;  %v1749_v47 = vsub.f32 %v2940_v14, %v1743_v33  ;;  %v1728_v55 = vmul.f32 1.442695, %v1727_v15 }
 0x235   : > { %v1750_v50 = vmul.f32 1.442695, %v1747_v46  ;;  %v1752_v49 = vmul.f32 1.442695, %v1748_v25  ;;  %v1754_v57 = vmul.f32 1.442695, %v1749_v47 }
 0x237   : > { %2298 = vpow2.f32 %v1750_v50 }
 0x238   : > { %2300 = vpow2.f32 %v1752_v49 }
 0x239   : > { %2302 = vpow2.f32 %v1754_v57 }
 0x23a   : > { %2304 = vpow2.f32 %v1728_v55 }
 0x244   : > { %v2299_v31 = vpop.eup %2298 }
 0x245   : > { %v2301_v59 = vpop.eup %2300  ;;  %v1756_v53 = vmul.f32 %v2299_v31, %v2947_v7 }
 0x246   : > { %v2303_v48 = vpop.eup %2302  ;;  %v1757_v58 = vmul.f32 %v2301_v59, %v2949_v51 }
 0x247   : > { %v1758_v61 = vmul.f32 %v2303_v48, %v2951_v11  ;;  %v2305_v14 = vpop.eup %2304 }
 0x248   : > { %v1762_v12 = vcombine.low %v1756_v53, %v1757_v58  ;;  %v1730_v29 = vmul.f32 %v2305_v14, %v1726_v16 }
 0x249   : > { %v1776_v52 = vrot.slane %v1758_v61, %v1707_v35 }
 0x24a   : > { %v1769_v2 = vrot.slane %v1762_v12, %v1707_v35 }
 0x24c   : > { %v1777_v32 = vcombine.low %v1769_v2, %v1776_v52 }
 0x24e   : > { %v1784_v8 = vrot.slane %v1777_v32, %v1707_v35 }
 0x250   : > { %v1786_v3 = vadd.f32 %v1784_v8, %v1730_v29 }
 0x252   : > { %1791 = vst.msk [vmem:[#allocation4] sm:$0x7] %vm2964_vm10, %v1786_v3 }
 0x253 PF: > { %p1906_p9 = scmp.ne.s32.totalorder %s2330_s17, 1 }
 0x255   : > { %1796 = sbr.rel (%p1906_p9) target bundleno = 618 (0x26a), region = 48 }
 0x25a   : > { %v1797_v7 = vld [vmem:[#allocation4] sm:$0x7]  ;;  %v1799_v51 = vlaneseq }
 0x25b   : > { %2306 = vrcp.f32 %v1797_v7 }
 0x25c   : > { %vm1801_vm11 = vcmp.lt.s32.totalorder %v1799_v51, 384 }
 0x268   : > { %v2307_v6 = vpop.eup %2306 }
 0x269   : > { %1803 = vst.msk [vmem:[%s2424_s30] sm:$0x7] %vm1801_vm11, %v2307_v6 }
 0x26a PF: > { %s15_s21 = sadd.s32 1, %s2346_s21   ;;  %s3002_s17 = smov %s2338_s19 }
 0x26b   : > { %p12_p10 = scmp.ge.s32.totalorder %s15_s21, 6   ;;  %s3003_s18 = smov %s2342_s20 }
 0x26c   : > { %s3004_s19 = smov %s3007_s3  ;;  %s3005_s20 = smov %s3011_s22 }
 0x26d   :  { %14 = sbr.rel (!%p12_p10) target bundleno = 3 (0x3), region = 81 }

</bundles_post_ra>
